<compile_context>
chip_gen: v7x
topology: tpu7x:2x2x1
jax: 0.10.0
libtpu: 0.0.40
codegen_flags: <defaults>
</compile_context>

<pallas_src>
import functools

import jax
import jax.numpy as jnp
from jax.experimental import pallas as pl
from jax.experimental.pallas import tpu as pltpu

LANES = 128


def _round_up(x, m):
    return ((x + m - 1) // m) * m


# ----------------------------- Pallas kernel --------------------------------
def _conv_bias_relu_kernel(x_ref, w_ref, b_ref, o_ref, *, kh, kw, oh, ow, stride):
    # x_ref: (1, H_pad, W_pad, Cin)   bf16 zero-padded NHWC image (one batch elem)
    # w_ref: (KH*KW, Cin, Cout_pad)   bf16 conv weights, Cout zero-padded to 128*
    # b_ref: (1, Cout_pad)            f32 bias
    # o_ref: (1, OH*OW, Cout_pad)     f32 output, lane-dense last dim
    x = x_ref[0]                                        # (H_pad, W_pad, Cin)
    cin = x.shape[-1]
    cout_pad = o_ref.shape[-1]

    acc = jnp.zeros((oh * ow, cout_pad), jnp.float32)
    # implicit GEMM: sum of KH*KW shifted pointwise matmuls (f32 accumulation)
    for i in range(kh):
        for j in range(kw):
            patch = x[i:i + (oh - 1) * stride + 1:stride,
                      j:j + (ow - 1) * stride + 1:stride, :]      # (OH, OW, Cin)
            patch2d = patch.reshape(oh * ow, cin)       # collapse leading dims
            acc = acc + jnp.dot(patch2d, w_ref[i * kw + j],
                                preferred_element_type=jnp.float32)

    out = jnp.maximum(acc + b_ref[...], 0.0)            # bias + ReLU, f32 epilogue
    o_ref[0] = out.astype(o_ref.dtype)


# ------------------------------ wrapper --------------------------------------
def conv_norm_act_forward(x_nchw, weight, bias, *, stride=1, padding=0):
    """ConvNormAct forward (norm='none', act='relu', pad_type='zero').

    x_nchw : (N, Cin, H, W)
    weight : (Cout, Cin, KH, KW)   -- PyTorch Conv2d layout
    bias   : (Cout,)
    returns: (N, Cout, OH, OW)
    """
    N, Cin, H, W = x_nchw.shape
    Cout, _, KH, KW = weight.shape

    # ZeroPad2d + NCHW->NHWC in one transpose + one pad, then bf16 (halves DMA).
    x = jnp.transpose(x_nchw, (0, 2, 3, 1))
    x = jnp.pad(x, ((0, 0), (padding, padding), (padding, padding), (0, 0)))
    x = x.astype(jnp.bfloat16)

    Hp, Wp = H + 2 * padding, W + 2 * padding
    OH = (Hp - KH) // stride + 1
    OW = (Wp - KW) // stride + 1

    # (Cout, Cin, KH, KW) -> (KH*KW, Cin, Cout_pad): matches the in-kernel
    # accumulation order; Cout zero-padded so stores are full-lane.
    Cout_pad = _round_up(Cout, LANES)
    w = jnp.transpose(weight, (2, 3, 1, 0)).reshape(KH * KW, Cin, Cout)
    w = jnp.pad(w, ((0, 0), (0, 0), (0, Cout_pad - Cout))).astype(jnp.bfloat16)
    b = jnp.pad(bias, (0, Cout_pad - Cout)).reshape(1, Cout_pad).astype(jnp.float32)

    kernel = functools.partial(_conv_bias_relu_kernel,
                               kh=KH, kw=KW, oh=OH, ow=OW, stride=stride)

    out = pl.pallas_call(
        kernel,
        out_shape=jax.ShapeDtypeStruct((N, OH * OW, Cout_pad), jnp.float32),
        grid_spec=pltpu.PrefetchScalarGridSpec(
            num_scalar_prefetch=0,
            grid=(N,),                                    # >=2 steps -> both v7x TCs
            in_specs=[
                pl.BlockSpec((1, Hp, Wp, Cin), lambda n: (n, 0, 0, 0)),
                pl.BlockSpec((KH * KW, Cin, Cout_pad), lambda n: (0, 0, 0)),
                pl.BlockSpec((1, Cout_pad), lambda n: (0, 0)),
            ],
            out_specs=pl.BlockSpec((1, OH * OW, Cout_pad), lambda n: (n, 0, 0)),
        ),
        compiler_params=pltpu.CompilerParams(
            dimension_semantics=("parallel",),
            vmem_limit_bytes=32 * 1024 * 1024),           # valid on v5e/v6e/v7x
    )(x, w, b)

    out = out[:, :, :Cout].reshape(N, OH, OW, Cout)       # drop lane padding
    return jnp.transpose(out, (0, 3, 1, 2))               # back to NCHW (PyTorch API)

# TODO(synk): norm in {'bn','in','ln','adain','sn'}, non-ReLU activations and
#             dropout are not exercised by the default ConvNormAct config.
# TODO(synk): for large spatial / Cin / Cout, halo-tile OH and add Cout
#             (parallel) + K (arbitrary) grid axes with a VMEM f32 accumulator
#             instead of keeping the whole image / weight resident.


# --------------------------------- main --------------------------------------
if __name__ == "__main__":
    key = jax.random.PRNGKey(0)
    k_x, k_w, k_b = jax.random.split(key, 3)

    N, Cin, H, W = 2, 4, 16, 16
    Cout, K = 8, 3
    padding = 1   # keep spatial size; padding is a ctor arg of the module

    x = jax.random.normal(k_x, (N, Cin, H, W), dtype=jnp.float32)
    # deterministic Conv2d-like init (uniform in +-1/sqrt(fan_in))
    fan_in = Cin * K * K
    bound = 1.0 / (fan_in ** 0.5)
    weight = jax.random.uniform(k_w, (Cout, Cin, K, K), jnp.float32, -bound, bound)
    bias = jax.random.uniform(k_b, (Cout,), jnp.float32, -bound, bound)

    out = conv_norm_act_forward(x, weight, bias, stride=1, padding=padding)
    out = jax.block_until_ready(out)

    # sanity check against pure-JAX reference (lax conv + bias + relu), f32
    ref = jax.lax.conv_general_dilated(
        x, weight, window_strides=(1, 1),
        padding=[(padding, padding), (padding, padding)],
        dimension_numbers=("NCHW", "OIHW", "NCHW"))
    ref = jnp.maximum(ref + bias[None, :, None, None], 0.0)
    assert out.shape == (N, Cout, H, W), out.shape
    # bf16 operands -> widened tolerance per review
    assert jnp.max(jnp.abs(out - ref)) < 5e-2, float(jnp.max(jnp.abs(out - ref)))

    print("KERNEL_OK")
</pallas_src>

<mosaic_0001>
module attributes {stable_mosaic.version = 11 : i64} {
  func.func @_conv_bias_relu_kernel(%arg0: i32, %arg1: memref<1x18x18x4xbf16, #tpu.memory_space<vmem>>, %arg2: memref<9x4x128xbf16, #tpu.memory_space<vmem>>, %arg3: memref<1x128xf32, #tpu.memory_space<vmem>>, %arg4: memref<1x256x128xf32, #tpu.memory_space<vmem>>) attributes {dimension_semantics = [#tpu.dimension_semantics<parallel>], iteration_bounds = array<i64: 2>, scalar_prefetch = 0 : i64, scratch_operands = 0 : i64, tpu.core_type = #tpu.core_type<tc>, window_params = [{transform_indices = @transform_0, window_bounds = array<i64: 1, 18, 18, 4>}, {pipeline_mode = #tpu.pipeline_mode<synchronous>, transform_indices = @transform_1, window_bounds = array<i64: 9, 4, 128>}, {pipeline_mode = #tpu.pipeline_mode<synchronous>, transform_indices = @transform_2, window_bounds = array<i64: 1, 128>}, {transform_indices = @transform_3, window_bounds = array<i64: 1, 256, 128>}]} {
    %c0 = arith.constant 0 : index
    %c0_0 = arith.constant 0 : index
    %c0_1 = arith.constant 0 : index
    %c0_2 = arith.constant 0 : index
    %0 = vector.load %arg1[%c0, %c0_0, %c0_1, %c0_2] : memref<1x18x18x4xbf16, #tpu.memory_space<vmem>>, vector<1x18x18x4xbf16>
    %1 = vector.shape_cast %0 : vector<1x18x18x4xbf16> to vector<18x18x4xbf16>
    %cst = arith.constant 0.000000e+00 : f32
    %2 = vector.broadcast %cst : f32 to vector<256x128xf32>
    %3 = vector.extract_strided_slice %1 {offsets = [0, 0, 0], sizes = [16, 16, 4], strides = [1, 1, 1]} : vector<18x18x4xbf16> to vector<16x16x4xbf16>
    %4 = vector.shape_cast %3 : vector<16x16x4xbf16> to vector<256x4xbf16>
    %c0_3 = arith.constant 0 : index
    %c0_4 = arith.constant 0 : index
    %c0_5 = arith.constant 0 : index
    %5 = vector.load %arg2[%c0_3, %c0_4, %c0_5] : memref<9x4x128xbf16, #tpu.memory_space<vmem>>, vector<1x4x128xbf16>
    %6 = vector.shape_cast %5 : vector<1x4x128xbf16> to vector<4x128xbf16>
    %cst_6 = arith.constant dense<0.000000e+00> : vector<256x128xf32>
    %7 = tpu.matmul %4, %6, %cst_6 {dimension_numbers = #tpu.dot_dimension_numbers<[1], [0], [0], [1], [0, 0, 1, 1], [], []>} : vector<256x4xbf16>, vector<4x128xbf16>, vector<256x128xf32> -> vector<256x128xf32>
    %8 = arith.addf %2, %7 : vector<256x128xf32>
    %9 = vector.extract_strided_slice %1 {offsets = [0, 1, 0], sizes = [16, 16, 4], strides = [1, 1, 1]} : vector<18x18x4xbf16> to vector<16x16x4xbf16>
    %10 = vector.shape_cast %9 : vector<16x16x4xbf16> to vector<256x4xbf16>
    %c1 = arith.constant 1 : index
    %c0_7 = arith.constant 0 : index
    %c0_8 = arith.constant 0 : index
    %11 = vector.load %arg2[%c1, %c0_7, %c0_8] : memref<9x4x128xbf16, #tpu.memory_space<vmem>>, vector<1x4x128xbf16>
    %12 = vector.shape_cast %11 : vector<1x4x128xbf16> to vector<4x128xbf16>
    %cst_9 = arith.constant dense<0.000000e+00> : vector<256x128xf32>
    %13 = tpu.matmul %10, %12, %cst_9 {dimension_numbers = #tpu.dot_dimension_numbers<[1], [0], [0], [1], [0, 0, 1, 1], [], []>} : vector<256x4xbf16>, vector<4x128xbf16>, vector<256x128xf32> -> vector<256x128xf32>
    %14 = arith.addf %8, %13 : vector<256x128xf32>
    %15 = vector.extract_strided_slice %1 {offsets = [0, 2, 0], sizes = [16, 16, 4], strides = [1, 1, 1]} : vector<18x18x4xbf16> to vector<16x16x4xbf16>
    %16 = vector.shape_cast %15 : vector<16x16x4xbf16> to vector<256x4xbf16>
    %c2 = arith.constant 2 : index
    %c0_10 = arith.constant 0 : index
    %c0_11 = arith.constant 0 : index
    %17 = vector.load %arg2[%c2, %c0_10, %c0_11] : memref<9x4x128xbf16, #tpu.memory_space<vmem>>, vector<1x4x128xbf16>
    %18 = vector.shape_cast %17 : vector<1x4x128xbf16> to vector<4x128xbf16>
    %cst_12 = arith.constant dense<0.000000e+00> : vector<256x128xf32>
    %19 = tpu.matmul %16, %18, %cst_12 {dimension_numbers = #tpu.dot_dimension_numbers<[1], [0], [0], [1], [0, 0, 1, 1], [], []>} : vector<256x4xbf16>, vector<4x128xbf16>, vector<256x128xf32> -> vector<256x128xf32>
    %20 = arith.addf %14, %19 : vector<256x128xf32>
    %21 = vector.extract_strided_slice %1 {offsets = [1, 0, 0], sizes = [16, 16, 4], strides = [1, 1, 1]} : vector<18x18x4xbf16> to vector<16x16x4xbf16>
    %22 = vector.shape_cast %21 : vector<16x16x4xbf16> to vector<256x4xbf16>
    %c3 = arith.constant 3 : index
    %c0_13 = arith.constant 0 : index
    %c0_14 = arith.constant 0 : index
    %23 = vector.load %arg2[%c3, %c0_13, %c0_14] : memref<9x4x128xbf16, #tpu.memory_space<vmem>>, vector<1x4x128xbf16>
    %24 = vector.shape_cast %23 : vector<1x4x128xbf16> to vector<4x128xbf16>
    %cst_15 = arith.constant dense<0.000000e+00> : vector<256x128xf32>
    %25 = tpu.matmul %22, %24, %cst_15 {dimension_numbers = #tpu.dot_dimension_numbers<[1], [0], [0], [1], [0, 0, 1, 1], [], []>} : vector<256x4xbf16>, vector<4x128xbf16>, vector<256x128xf32> -> vector<256x128xf32>
    %26 = arith.addf %20, %25 : vector<256x128xf32>
    %27 = vector.extract_strided_slice %1 {offsets = [1, 1, 0], sizes = [16, 16, 4], strides = [1, 1, 1]} : vector<18x18x4xbf16> to vector<16x16x4xbf16>
    %28 = vector.shape_cast %27 : vector<16x16x4xbf16> to vector<256x4xbf16>
    %c4 = arith.constant 4 : index
    %c0_16 = arith.constant 0 : index
    %c0_17 = arith.constant 0 : index
    %29 = vector.load %arg2[%c4, %c0_16, %c0_17] : memref<9x4x128xbf16, #tpu.memory_space<vmem>>, vector<1x4x128xbf16>
    %30 = vector.shape_cast %29 : vector<1x4x128xbf16> to vector<4x128xbf16>
    %cst_18 = arith.constant dense<0.000000e+00> : vector<256x128xf32>
    %31 = tpu.matmul %28, %30, %cst_18 {dimension_numbers = #tpu.dot_dimension_numbers<[1], [0], [0], [1], [0, 0, 1, 1], [], []>} : vector<256x4xbf16>, vector<4x128xbf16>, vector<256x128xf32> -> vector<256x128xf32>
    %32 = arith.addf %26, %31 : vector<256x128xf32>
    %33 = vector.extract_strided_slice %1 {offsets = [1, 2, 0], sizes = [16, 16, 4], strides = [1, 1, 1]} : vector<18x18x4xbf16> to vector<16x16x4xbf16>
    %34 = vector.shape_cast %33 : vector<16x16x4xbf16> to vector<256x4xbf16>
    %c5 = arith.constant 5 : index
    %c0_19 = arith.constant 0 : index
    %c0_20 = arith.constant 0 : index
    %35 = vector.load %arg2[%c5, %c0_19, %c0_20] : memref<9x4x128xbf16, #tpu.memory_space<vmem>>, vector<1x4x128xbf16>
    %36 = vector.shape_cast %35 : vector<1x4x128xbf16> to vector<4x128xbf16>
    %cst_21 = arith.constant dense<0.000000e+00> : vector<256x128xf32>
    %37 = tpu.matmul %34, %36, %cst_21 {dimension_numbers = #tpu.dot_dimension_numbers<[1], [0], [0], [1], [0, 0, 1, 1], [], []>} : vector<256x4xbf16>, vector<4x128xbf16>, vector<256x128xf32> -> vector<256x128xf32>
    %38 = arith.addf %32, %37 : vector<256x128xf32>
    %39 = vector.extract_strided_slice %1 {offsets = [2, 0, 0], sizes = [16, 16, 4], strides = [1, 1, 1]} : vector<18x18x4xbf16> to vector<16x16x4xbf16>
    %40 = vector.shape_cast %39 : vector<16x16x4xbf16> to vector<256x4xbf16>
    %c6 = arith.constant 6 : index
    %c0_22 = arith.constant 0 : index
    %c0_23 = arith.constant 0 : index
    %41 = vector.load %arg2[%c6, %c0_22, %c0_23] : memref<9x4x128xbf16, #tpu.memory_space<vmem>>, vector<1x4x128xbf16>
    %42 = vector.shape_cast %41 : vector<1x4x128xbf16> to vector<4x128xbf16>
    %cst_24 = arith.constant dense<0.000000e+00> : vector<256x128xf32>
    %43 = tpu.matmul %40, %42, %cst_24 {dimension_numbers = #tpu.dot_dimension_numbers<[1], [0], [0], [1], [0, 0, 1, 1], [], []>} : vector<256x4xbf16>, vector<4x128xbf16>, vector<256x128xf32> -> vector<256x128xf32>
    %44 = arith.addf %38, %43 : vector<256x128xf32>
    %45 = vector.extract_strided_slice %1 {offsets = [2, 1, 0], sizes = [16, 16, 4], strides = [1, 1, 1]} : vector<18x18x4xbf16> to vector<16x16x4xbf16>
    %46 = vector.shape_cast %45 : vector<16x16x4xbf16> to vector<256x4xbf16>
    %c7 = arith.constant 7 : index
    %c0_25 = arith.constant 0 : index
    %c0_26 = arith.constant 0 : index
    %47 = vector.load %arg2[%c7, %c0_25, %c0_26] : memref<9x4x128xbf16, #tpu.memory_space<vmem>>, vector<1x4x128xbf16>
    %48 = vector.shape_cast %47 : vector<1x4x128xbf16> to vector<4x128xbf16>
    %cst_27 = arith.constant dense<0.000000e+00> : vector<256x128xf32>
    %49 = tpu.matmul %46, %48, %cst_27 {dimension_numbers = #tpu.dot_dimension_numbers<[1], [0], [0], [1], [0, 0, 1, 1], [], []>} : vector<256x4xbf16>, vector<4x128xbf16>, vector<256x128xf32> -> vector<256x128xf32>
    %50 = arith.addf %44, %49 : vector<256x128xf32>
    %51 = vector.extract_strided_slice %1 {offsets = [2, 2, 0], sizes = [16, 16, 4], strides = [1, 1, 1]} : vector<18x18x4xbf16> to vector<16x16x4xbf16>
    %52 = vector.shape_cast %51 : vector<16x16x4xbf16> to vector<256x4xbf16>
    %c8 = arith.constant 8 : index
    %c0_28 = arith.constant 0 : index
    %c0_29 = arith.constant 0 : index
    %53 = vector.load %arg2[%c8, %c0_28, %c0_29] : memref<9x4x128xbf16, #tpu.memory_space<vmem>>, vector<1x4x128xbf16>
    %54 = vector.shape_cast %53 : vector<1x4x128xbf16> to vector<4x128xbf16>
    %cst_30 = arith.constant dense<0.000000e+00> : vector<256x128xf32>
    %55 = tpu.matmul %52, %54, %cst_30 {dimension_numbers = #tpu.dot_dimension_numbers<[1], [0], [0], [1], [0, 0, 1, 1], [], []>} : vector<256x4xbf16>, vector<4x128xbf16>, vector<256x128xf32> -> vector<256x128xf32>
    %56 = arith.addf %50, %55 : vector<256x128xf32>
    %c0_31 = arith.constant 0 : index
    %c0_32 = arith.constant 0 : index
    %57 = vector.load %arg3[%c0_31, %c0_32] : memref<1x128xf32, #tpu.memory_space<vmem>>, vector<1x128xf32>
    %58 = vector.broadcast %57 : vector<1x128xf32> to vector<256x128xf32>
    %59 = arith.addf %56, %58 : vector<256x128xf32>
    %cst_33 = arith.constant 0.000000e+00 : f32
    %60 = vector.broadcast %cst_33 : f32 to vector<256x128xf32>
    %61 = arith.maximumf %59, %60 : vector<256x128xf32>
    %c0_34 = arith.constant 0 : index
    %c0_35 = arith.constant 0 : index
    %c0_36 = arith.constant 0 : index
    %62 = vector.load %arg4[%c0_34, %c0_35, %c0_36] : memref<1x256x128xf32, #tpu.memory_space<vmem>>, vector<1x256x128xf32>
    %63 = vector.shape_cast %62 : vector<1x256x128xf32> to vector<256x128xf32>
    %64 = vector.shape_cast %61 : vector<256x128xf32> to vector<1x256x128xf32>
    tpu.vector_store %arg4[%c0_34, %c0_35, %c0_36], %64 {strides = array<i32>} : memref<1x256x128xf32, #tpu.memory_space<vmem>>, vector<1x256x128xf32>,
    return
  }
  func.func @transform_0(%arg0: i32) -> (i32, i32, i32, i32) {
    %c0_i32 = arith.constant 0 : i32
    %c0_i32_0 = arith.constant 0 : i32
    %c0_i32_1 = arith.constant 0 : i32
    %c0_i32_2 = arith.constant 0 : i32
    return %arg0, %c0_i32, %c0_i32_0, %c0_i32_1 : i32, i32, i32, i32
  }
  func.func @transform_1(%arg0: i32) -> (i32, i32, i32) {
    %c0_i32 = arith.constant 0 : i32
    %c0_i32_0 = arith.constant 0 : i32
    %c0_i32_1 = arith.constant 0 : i32
    %c0_i32_2 = arith.constant 0 : i32
    return %c0_i32, %c0_i32_0, %c0_i32_1 : i32, i32, i32
  }
  func.func @transform_2(%arg0: i32) -> (i32, i32) {
    %c0_i32 = arith.constant 0 : i32
    %c0_i32_0 = arith.constant 0 : i32
    %c0_i32_1 = arith.constant 0 : i32
    return %c0_i32, %c0_i32_0 : i32, i32
  }
  func.func @transform_3(%arg0: i32) -> (i32, i32, i32) {
    %c0_i32 = arith.constant 0 : i32
    %c0_i32_0 = arith.constant 0 : i32
    %c0_i32_1 = arith.constant 0 : i32
    return %arg0, %c0_i32, %c0_i32_0 : i32, i32, i32
  }
}

</mosaic_0001>

<bundles_post_ra>
// kernel: tpu_custom_call.1
= control target key start
LH: loop header
LB: loop body
LE: loop exit
PB: predicated region body
PF: predicated region fallthrough
CT: control target
= control target key end

     0   :  { %8 = vsyncpa [#allocation3], 0  ;;  %s5319_s0 = inlined_call_operand.vmem [shape: bf16[2,18,18,4], index: 0, kind: input, shape index: {}]   ;;  %s5320_s1 = inlined_call_operand.vmem [shape: bf16[9,4,128], index: 1, kind: input, shape index: {}]   ;;  %s5321_s2 = inlined_call_operand.vmem [shape: f32[1,128], index: 2, kind: input, shape index: {}]   ;;  %s5322_s3 = inlined_call_operand.hbm [shape: f32[2,256,128], index: 3, kind: output, shape index: {}]  }
   0x1   :  { %10 = vsyncpa [#allocation3 + $0x1], 0  ;;  %s4179_s12 = smov 0   ;;  %s4181_s13 = smov 0  }
   0x2   :  { %s4183_s14 = smov 0   ;;  %s4185_s15 = smov 0  }
   0x3 LB: > { %s4200_s16 = sadd.s32 4294967295, %s4154_s15   ;;  %s3064_s17 = sadd.s32 4294967294, %s4154_s15   ;;  %s4154_s15 = sphi %s4185_s15, %s5405_s15   ;;  %s4150_s14 = sphi %s4183_s14, %s5404_s14   ;;  %s4146_s13 = sphi %s4181_s13, %s5403_s13   ;;  %s4142_s12 = sphi %s4179_s12, %s5402_s12  }
   0x4   : > { %s4204_s18 = sadd.s32 1, %s4154_s15   ;;  %s91_s19 = sadd.s32 1, %s4150_s14 }
   0x5   : > { %s88_s20 = ssub.s32 %s4154_s15, %s4204_s18  ;;  %p101_p0 = scmp.ne.s32.totalorder %s4150_s14, %s4146_s13 }
   0x6   : > { %p89_p1 = scmp.eq.s32.totalorder %s88_s20, 0  ;;  %p102_p2 = scmp.eq.s32.totalorder %s4200_s16, 1 }
   0x7   : > { %p107_p3 = scmp.ne.s32.totalorder %s4146_s13, %s4142_s12  ;;  %p108_p4 = scmp.eq.s32.totalorder %s3064_s17, 1 }
   0x8   : > { %s4215_s21 = scalar_select %p89_p1, %s4150_s14, %s91_s19  }
   0x9   : > { %p4217_p5 = por %p102_p2, %p101_p0  ;;  %p4221_p6 = por %p108_p4, %p107_p3 }
   0xa   : > { %p3067_p7 = scmp.ge.s32.totalorder %s4154_s15, 1  ;;  %p140_p8 = scmp.lt.s32.totalorder %s4154_s15, 3 }
   0xc   : > { %p141_p9 = pnand %p3067_p7, %p140_p8 }
   0xe   : > { %144 = sbr.rel (%p141_p9) target bundleno = 576 (0x240), region = 32 }
  0x15   : > { %v3070_v0 = vld [vmem:[%s5320_s1 + $0x2] sm:$0x3]  ;;  %vm711_vm0 = vcmask 1041408   ;;  %v3202_v1 = vld [vmem:[%s5320_s1 + $0x8] sm:$0x3]  ;;  %p164_p10 = scmp.lt.s32.totalorder %s4200_s16, 1 }
  0x16   : > { %4018 = vmatprep.subr.msk.bf16.mxu1 %vm711_vm0, %v3070_v0  ;;  %4022 = vmatprep.subr.msk.bf16.mxu0 %vm711_vm0, %v3202_v1  ;;  %v713_v2 = vsel %vm711_vm0, %v3070_v0, 0  ;;  %v4238_v3 = vsel %vm711_vm0, %v3202_v1, 0  ;;  %v224_v4 = vld [vmem:[%s5320_s1] sm:$0x3]  ;;  %v3221_v5 = vld [vmem:[%s5320_s1 + $0xa] sm:$0x3] }
  0x17   : > { %5356 = vst [vmem:[#allocation5_spill] sm:$0xff] %v4238_v3  ;;  %3455 = vmatpush3.bf16.msra.mxu1 %v713_v2  ;;  %3591 = vmatpush3.bf16.msra.mxu0 %v4238_v3  ;;  %s165_s28 = scalar_select %p164_p10, %s4200_s16, 1  ;;  %vm225_vm1 = vsmask.f32 3328  ;;  %vm226_vm2 = vsmask.f32 7440 }
  0x18   : > { %4019 = vmatprep.subr.msk.bf16.mxu1 %vm711_vm0, %v224_v4  ;;  %4024 = vmatprep.subr.msk.bf16.mxu0 %vm711_vm0, %v3221_v5  ;;  %v4256_v6 = vsel %vm711_vm0, %v224_v4, 0  ;;  %v4259_v7 = vsel %vm711_vm0, %v3221_v5, 0  ;;  %v4264_v8 = vld [vmem:[%s5320_s1 + $0xc] sm:$0x3]  ;;  %vm662_vm3 = vcmask 31744   ;;  %vm4300_vm4 = vmor %vm225_vm1, %vm226_vm2  ;;  %vm1184_vm5 = vcmask 1042432  }
  0x19   : > { %s4028_s6 = smul.u32 216, %s165_s28  ;;  %v4288_v20 = vsel %vm711_vm0, %v4264_v8, 0  ;;  %vm1185_vm6 = vcmask 1046532   ;;  %s161_s4 = sand.u32 1, %s4146_s13  }
  0x1a   : > { %vm4481_vm7 = vmor %vm1184_vm5, %vm1185_vm6  ;;  %s3068_s7 = sshll.u32 %s161_s4, 8  ;;  %s4156_s24 = smov [#allocation2]  }
  0x1b   : > { %s4253_s9 = scalar_lea.vmem %s5319_s0, %s4028_s6  ;;  %s5201_s8 = scalar_lea.vmem [#allocation2], %s3068_s7 }
  0x1c   : > { %v4267_v9 = vld [vmem:[%s4253_s9] sm:$0xf]  ;;  %v4270_v10 = vld [vmem:[%s4253_s9 + $0x4] sm:$0xf]  ;;  %v172_v11 = vld [vmem:[%s4253_s9 + $0x8] sm:$0x1] }
  0x1d   : > { %v229_v12 = vshrl.u32 %v4267_v9, 16  ;;  %v232_v13 = vshll.u32 %v4267_v9, 16  ;;  %v238_v14 = vshll.u32 %v4270_v10, 16  ;;  %v242_v15 = vshrl.u32 %v4270_v10, 16  ;;  %v4278_v16 = vld [vmem:[%s4253_s9 + $0xc] sm:$0xf] }
  0x1e   : > { %v248_v17 = vshll.u32 %v172_v11, 16  ;;  %v4281_v18 = vld [vmem:[%s4253_s9 + $0x10] sm:$0xf]  ;;  %v4284_v19 = vld [vmem:[%s4253_s9 + $0x14] sm:$0x1]  ;;  %v253_v26 = vshrl.u32 %v4278_v16, 16 }
  0x1f   : > { %v231_v21 = vrot.slane %v229_v12, 4  ;;  %v234_v22 = vrot.slane %v232_v13, 5  ;;  %v240_v23 = vrot.slane %v238_v14, 5  ;;  %v244_v24 = vrot.slane %v242_v15, 4  ;;  %v4296_v33 = vld [vmem:[%s4253_s9 + $0x18] sm:$0xf] }
  0x20   : > { %v250_v25 = vrot.slane %v248_v17, 5  ;;  %v256_v27 = vshll.u32 %v4278_v16, 16  ;;  %v262_v28 = vshll.u32 %v4281_v18, 16  ;;  %v266_v31 = vshrl.u32 %v4281_v18, 16  ;;  %v4309_v39 = vld [vmem:[%s4253_s9 + $0x1c] sm:$0xf] }
  0x21   : > { %v235_v29 = vor.u32 %v234_v22, %v231_v21  ;;  %v245_v30 = vor.u32 %v244_v24, %v240_v23  ;;  %v272_v32 = vshll.u32 %v4284_v19, 16  ;;  %v255_v35 = vrot.slane %v253_v26, 4  ;;  %v4313_v46 = vld [vmem:[%s4253_s9 + $0x20] sm:$0x1]  ;;  %v4323_v57 = vld [vmem:[%s4253_s9 + $0x24] sm:$0xf] }
  0x22   : > { %v258_v36 = vrot.slane %v256_v27, 5  ;;  %v264_v37 = vrot.slane %v262_v28, 5  ;;  %v4306_v38 = vcombine.low %v4278_v16, %v4281_v18  ;;  %v268_v42 = vrot.slane %v266_v31, 4  ;;  %v4328_v62 = vld [vmem:[%s4253_s9 + $0x28] sm:$0xf]  ;;  %s3002_s10 = sshll.u32 %s5201_s8, 4  ;;  %s5271_s10 = int_to_ptr.vmem [resolvable:$true] %s3002_s10 }
  0x23   : > { %v236_v40 = vrot.slane %v235_v29, 4  ;;  %v246_v41 = vrot.slane %v245_v30, 4  ;;  %v274_v43 = vrot.slane %v272_v32, 5  ;;  %v1199_v45 = vrot.slane %v4284_v19, 5  ;;  %v4336_v4 = vld [vmem:[%s4253_s9 + $0x2c] sm:$0x1] }
  0x24   : > { %v259_v44 = vor.u32 %v258_v36, %v255_v35  ;;  %v277_v47 = vshrl.u32 %v4296_v33, 16  ;;  %v280_v48 = vshll.u32 %v4296_v33, 16  ;;  %v269_v51 = vor.u32 %v268_v42, %v264_v37  ;;  %v4342_v14 = vld [vmem:[%s4253_s9 + $0x30] sm:$0xf]  ;;  %v4354_v28 = vld [vmem:[%s4253_s9 + $0x34] sm:$0xf] }
  0x25   : > { %v241_v49 = vsel %vm4300_vm4, %v236_v40, %v240_v23  ;;  %v251_v50 = vsel %vm4300_vm4, %v246_v41, %v250_v25  ;;  %v286_v52 = vshll.u32 %v4309_v39, 16  ;;  %v290_v60 = vshrl.u32 %v4309_v39, 16  ;;  %v4349_v23 = vld [vmem:[%s5320_s1 + $0x4] sm:$0x3]  ;;  %v4361_v32 = vld [vmem:[%s4253_s9 + $0x38] sm:$0x1] }
  0x26   : > { %v3071_v53 = vcombine.low %v241_v49, %v251_v50  ;;  %v260_v54 = vrot.slane %v259_v44, 4  ;;  %v279_v55 = vrot.slane %v277_v47, 4  ;;  %v282_v56 = vrot.slane %v280_v48, 5  ;;  %v4369_v48 = vld [vmem:[%s4253_s9 + $0x3c] sm:$0xf]  ;;  %s4092_s20 = scalar_lea.vmem %s5271_s10, 4096 }
  0x27   : > { %v270_v58 = vrot.slane %v269_v51, 4  ;;  %v288_v59 = vrot.slane %v286_v52, 5  ;;  %v296_v61 = vshll.u32 %v4313_v46, 16  ;;  %v1203_v1 = vrot.slane %v4309_v39, 5  ;;  %v4377_v52 = vld [vmem:[%s4253_s9 + $0x40] sm:$0xf]  ;;  %p4093_p11 = scmp.ne.s32.totalorder %s5271_s10, %s4092_s20 }
  0x28   : > { %3456 = vmatprep.mubr.msk.bf16.mxu1 %vm662_vm3, %v3071_v53  ;;  %v265_v63 = vsel %vm4300_vm4, %v260_v54, %v264_v37  ;;  %v283_v0 = vor.u32 %v282_v56, %v279_v55  ;;  %v1206_v2 = vrot.slane %v4313_v46, 5  ;;  %v292_v11 = vrot.slane %v290_v60, 4  ;;  %s4096_s25 = sshll.u32 %s4156_s24, 4  ;;  %s4097_s25 = int_to_ptr.vmem [resolvable:$false] %s4096_s25 }
  0x29   : > { %v275_v5 = vsel %vm4300_vm4, %v270_v58, %v274_v43  ;;  %v298_v12 = vrot.slane %v296_v61, 5  ;;  %v301_v13 = vshrl.u32 %v4323_v57, 16  ;;  %v304_v21 = vshll.u32 %v4323_v57, 16  ;;  %p4094_p12 = pnand %p4093_p11, %p4217_p5  ;;  %s4098_s26 = scalar_lea.vmem %s4097_s25, 8192 }
  0x2a   : > { %v3072_v15 = vcombine.low %v265_v63, %v275_v5  ;;  %v284_v17 = vrot.slane %v283_v0, 4  ;;  %v310_v22 = vshll.u32 %v4328_v62, 16  ;;  %v293_v24 = vor.u32 %v292_v11, %v288_v59  ;;  %v4389_v5 = vld [vmem:[%s4253_s9 + $0x44] sm:$0x1]  ;;  %p4099_p0 = scmp.lt.s32.totalorder %s5271_s10, %s4097_s25  ;;  %p4100_p1 = scmp.lt.s32.totalorder %s4098_s26, %s4092_s20 }
  0x2b   : > { %v303_v25 = vrot.slane %v301_v13, 4  ;;  %v314_v26 = vshrl.u32 %v4328_v62, 16  ;;  %v320_v27 = vshll.u32 %v4336_v4, 16  ;;  %v306_v30 = vrot.slane %v304_v21, 5  ;;  %v4394_v13 = vld [vmem:[%s4253_s9 + $0x48] sm:$0xf]  ;;  %p4095_p13 = pneg %p4094_p12 }
  0x2c   : > { %3592 = vmatprep.mubr.msk.bf16.mxu0 %vm662_vm3, %v3072_v15  ;;  %3457 = vmatmul.mubr.msk.bf16.vlgmr.msra.gmra.mrb[0].mxu1 %vm662_vm3, %v3072_v15  ;;  %v289_v29 = vsel %vm4300_vm4, %v284_v17, %v288_v59  ;;  %v312_v31 = vrot.slane %v310_v22, 5  ;;  %v325_v35 = vshrl.u32 %v4342_v14, 16  ;;  %v294_v36 = vrot.slane %v293_v24, 4  ;;  %v4401_v24 = vld [vmem:[%s4253_s9 + $0x4c] sm:$0xf]  ;;  %p4101_p2 = por %p4100_p1, %p4099_p0 }
  0x2d   : > { %3489 = vmatpush3.bf16.msra.mxu1 %v4256_v6  ;;  %v316_v37 = vrot.slane %v314_v26, 4  ;;  %v322_v40 = vrot.slane %v320_v27, 5  ;;  %v328_v41 = vshll.u32 %v4342_v14, 16  ;;  %v307_v42 = vor.u32 %v306_v30, %v303_v25 }
  0x2e   : > { %v327_v43 = vrot.slane %v325_v35, 4  ;;  %v334_v44 = vshll.u32 %v4354_v28, 16  ;;  %v338_v47 = vshrl.u32 %v4354_v28, 16  ;;  %4020 = vmatprep.subr.msk.bf16.mxu1 %vm711_vm0, %v4349_v23  ;;  %v299_v49 = vsel %vm4300_vm4, %v294_v36, %v298_v12  ;;  %p4102_p3 = pnand %p4101_p2, %p4095_p13 }
  0x2f   : > { %v317_v6 = vor.u32 %v316_v37, %v312_v31  ;;  %v330_v50 = vrot.slane %v328_v41, 5  ;;  %v344_v51 = vshll.u32 %v4361_v32, 16  ;;  %v4379_v53 = vcombine.low %v289_v29, %v299_v49 }
  0x30   : > { %v308_v54 = vrot.slane %v307_v42, 4  ;;  %v336_v55 = vrot.slane %v334_v44, 5  ;;  %v340_v56 = vrot.slane %v338_v47, 4  ;;  %v349_v61 = vshrl.u32 %v4369_v48, 16  ;;  %v4423_v42 = vld [vmem:[%s4253_s9 + $0x54] sm:$0xf] }
  0x31   : > { %5359 = vst [vmem:[#allocation6_spill] sm:$0xff] %v4379_v53  ;;  %v318_v58 = vrot.slane %v317_v6, 4  ;;  %v331_v59 = vor.u32 %v330_v50, %v327_v43  ;;  %v346_v60 = vrot.slane %v344_v51, 5  ;;  %3593 = vmatmul.mubr.msk.bf16.vlgmr.msra.gmra.mrb[0].mxu0 %vm662_vm3, %v4379_v53  ;;  %3460 = vmatprep.mubr.msk.bf16.mxu1 %vm662_vm3, %v4379_v53  ;;  %v352_v11 = vshll.u32 %v4369_v48, 16  ;;  %5361 = vst [vmem:[#allocation8_spill] sm:$0xff] %v4423_v42 }
  0x32   : > { %v313_v63 = vsel %vm4300_vm4, %v308_v54, %v312_v31  ;;  %v341_v0 = vor.u32 %v340_v56, %v336_v55  ;;  %v358_v12 = vshll.u32 %v4377_v52, 16  ;;  %3625 = vmatpush3.bf16.msra.mxu0 %v4259_v7  ;;  %v351_v21 = vrot.slane %v349_v61, 4  ;;  %v4428_v6 = vld [vmem:[%s4253_s9 + $0x58] sm:$0xf] }
  0x33   : > { %v323_v15 = vsel %vm4300_vm4, %v318_v58, %v322_v40  ;;  %v332_v17 = vrot.slane %v331_v59, 4  ;;  %v362_v22 = vshrl.u32 %v4377_v52, 16  ;;  %v354_v27 = vrot.slane %v352_v11, 5  ;;  %4025 = vmatprep.subr.msk.bf16.mxu0 %vm711_vm0, %v4264_v8  ;;  %v4418_v8 = vld [vmem:[%s4253_s9 + $0x50] sm:$0x1] }
  0x34   : > { %v4403_v25 = vcombine.low %v313_v63, %v323_v15  ;;  %v342_v26 = vrot.slane %v341_v0, 4  ;;  %v360_v29 = vrot.slane %v358_v12, 5  ;;  %v368_v31 = vshll.u32 %v4389_v5, 16  ;;  %v4441_v11 = vld [vmem:[%s4253_s9 + $0x5c] sm:$0x1] }
  0x35   : > { %v337_v7 = vsel %vm4300_vm4, %v332_v17, %v336_v55  ;;  %v364_v30 = vrot.slane %v362_v22, 4  ;;  %v373_v35 = vshrl.u32 %v4394_v13, 16  ;;  %v355_v37 = vor.u32 %v354_v27, %v351_v21  ;;  %v4445_v15 = vld [vmem:[%s4253_s9 + $0x60] sm:$0xf]  ;;  %v4450_v27 = vld [vmem:[%s4253_s9 + $0x64] sm:$0xf] }
  0x36   : > { %5360 = vst [vmem:[#allocation7_spill] sm:$0xff] %v4403_v25  ;;  %3596 = vmatprep.mubr.msk.bf16.mxu0 %vm662_vm3, %v4403_v25  ;;  %3461 = vmatmul.mubr.msk.bf16.gmra.mrb[4].mxu1 %vm662_vm3, %v4403_v25  ;;  %v347_v36 = vsel %vm4300_vm4, %v342_v26, %v346_v60  ;;  %v376_v40 = vshll.u32 %v4394_v13, 16  ;;  %v382_v41 = vshll.u32 %v4401_v24, 16  ;;  %v370_v47 = vrot.slane %v368_v31, 5  ;;  %v4662_v25 = vld [vmem:[%s4253_s9 + $0xa8] sm:$0xf] }
  0x37   : > { %v4425_v43 = vcombine.low %v337_v7, %v347_v36  ;;  %v365_v44 = vor.u32 %v364_v30, %v360_v29  ;;  %v375_v49 = vrot.slane %v373_v35, 4  ;;  %v356_v50 = vrot.slane %v355_v37, 4 }
  0x38   : > { %v378_v51 = vrot.slane %v376_v40, 5  ;;  %v384_v54 = vrot.slane %v382_v41, 5  ;;  %v386_v55 = vshrl.u32 %v4401_v24, 16  ;;  %v392_v58 = vshll.u32 %v4418_v8, 16 }
  0x39   : > { %5362 = vst [vmem:[#allocation9_spill] sm:$0xff] %v4425_v43  ;;  %3464 = vmatprep.mubr.msk.bf16.mxu1 %vm662_vm3, %v4425_v43  ;;  %v366_v56 = vrot.slane %v365_v44, 4  ;;  %v397_v59 = vshrl.u32 %v4423_v42, 16  ;;  %v400_v60 = vshll.u32 %v4423_v42, 16  ;;  %3597 = vmatmul.mubr.msk.bf16.gmra.mrb[4].mxu0 %vm662_vm3, %v4425_v43  ;;  %v361_v61 = vsel %vm4300_vm4, %v356_v50, %v360_v29 }
  0x3a   : > { %v379_v63 = vor.u32 %v378_v51, %v375_v49  ;;  %v388_v0 = vrot.slane %v386_v55, 4  ;;  %v406_v12 = vshll.u32 %v4428_v6, 16  ;;  %v394_v21 = vrot.slane %v392_v58, 5 }
  0x3b   : > { %v371_v17 = vsel %vm4300_vm4, %v366_v56, %v370_v47  ;;  %v399_v22 = vrot.slane %v397_v59, 4  ;;  %v402_v26 = vrot.slane %v400_v60, 5  ;;  %v410_v36 = vshrl.u32 %v4428_v6, 16  ;;  %v4464_v47 = vld [vmem:[%s4253_s9 + $0x68] sm:$0x1] }
  0x3c   : > { %v4452_v7 = vcombine.low %v361_v61, %v371_v17  ;;  %v380_v29 = vrot.slane %v379_v63, 4  ;;  %v389_v30 = vor.u32 %v388_v0, %v384_v54  ;;  %v408_v31 = vrot.slane %v406_v12, 5 }
  0x3d   : > { %v403_v35 = vor.u32 %v402_v26, %v399_v22  ;;  %v416_v37 = vshll.u32 %v4441_v11, 16  ;;  %v421_v40 = vshrl.u32 %v4445_v15, 16  ;;  %v424_v49 = vshll.u32 %v4445_v15, 16 }
  0x3e   : > { %5363 = vst [vmem:[#allocation10_spill] sm:$0xff] %v4452_v7  ;;  %3600 = vmatprep.mubr.msk.bf16.mxu0 %vm662_vm3, %v4452_v7  ;;  %3465 = vmatmul.mubr.msk.bf16.gmra.mrb[8].mxu1 %vm662_vm3, %v4452_v7  ;;  %v385_v41 = vsel %vm4300_vm4, %v380_v29, %v384_v54  ;;  %v390_v44 = vrot.slane %v389_v30, 4  ;;  %v430_v50 = vshll.u32 %v4450_v27, 16  ;;  %v412_v55 = vrot.slane %v410_v36, 4  ;;  %v4472_v54 = vld [vmem:[%s4253_s9 + $0x6c] sm:$0xf] }
  0x3f   : > { %v404_v51 = vrot.slane %v403_v35, 4  ;;  %v418_v56 = vrot.slane %v416_v37, 5  ;;  %v423_v58 = vrot.slane %v421_v40, 4  ;;  %v426_v60 = vrot.slane %v424_v49, 5  ;;  %v4488_v36 = vld [vmem:[%s4253_s9 + $0x70] sm:$0xf] }
  0x40   : > { %v395_v59 = vsel %vm4300_vm4, %v390_v44, %v394_v21  ;;  %v432_v61 = vrot.slane %v430_v50, 5  ;;  %v434_v63 = vshrl.u32 %v4450_v27, 16  ;;  %v413_v17 = vor.u32 %v412_v55, %v408_v31  ;;  %v4639_v7 = vld [vmem:[%s4253_s9 + $0xa0] sm:$0xf] }
  0x41   : > { %v4474_v0 = vcombine.low %v385_v41, %v395_v59  ;;  %v409_v12 = vsel %vm4300_vm4, %v404_v51, %v408_v31  ;;  %v440_v22 = vshll.u32 %v4464_v47, 16  ;;  %v427_v21 = vor.u32 %v426_v60, %v423_v58  ;;  %v4501_v51 = vld [vmem:[%s4253_s9 + $0x74] sm:$0x1] }
  0x42   : > { %v436_v29 = vrot.slane %v434_v63, 4  ;;  %v3136_v30 = vrot.slane %v4278_v16, 9  ;;  %v1196_v35 = vrot.slane %v4281_v18, 5  ;;  %v414_v31 = vrot.slane %v413_v17, 4 }
  0x43   : > { %5364 = vst [vmem:[#allocation11_spill] sm:$0xff] %v4474_v0  ;;  %3601 = vmatmul.mubr.msk.bf16.gmra.mrb[8].mxu0 %vm662_vm3, %v4474_v0  ;;  %3468 = vmatprep.mubr.msk.bf16.mxu1 %vm662_vm3, %v4474_v0  ;;  %v442_v37 = vrot.slane %v440_v22, 5  ;;  %v445_v40 = vshrl.u32 %v4472_v54, 16  ;;  %v448_v41 = vshll.u32 %v4472_v54, 16  ;;  %v428_v44 = vrot.slane %v427_v21, 4 }
  0x44   : > { %v437_v49 = vor.u32 %v436_v29, %v432_v61  ;;  %v1197_v16 = vsel %vm4481_vm7, %v3136_v30, %v1196_v35  ;;  %v1198_v18 = vrot.slane %v1196_v35, 4  ;;  %v419_v50 = vsel %vm4300_vm4, %v414_v31, %v418_v56  ;;  %v4513_v56 = vld [vmem:[%s4253_s9 + $0x78] sm:$0xf]  ;;  %v4529_v31 = vld [vmem:[%s4253_s9 + $0x7c] sm:$0xf] }
  0x45   : > { %v447_v55 = vrot.slane %v445_v40, 4  ;;  %v450_v58 = vrot.slane %v448_v41, 5  ;;  %v454_v59 = vshll.u32 %v4488_v36, 16  ;;  %v4504_v60 = vcombine.low %v409_v12, %v419_v50 }
  0x46   : > { %v433_v63 = vsel %vm4300_vm4, %v428_v44, %v432_v61  ;;  %v438_v17 = vrot.slane %v437_v49, 4  ;;  %v1200_v22 = vsel %vm4481_vm7, %v1198_v18, %v1199_v45  ;;  %v458_v35 = vshrl.u32 %v4488_v36, 16  ;;  %v4534_v49 = vld [vmem:[%s4253_s9 + $0x80] sm:$0x1] }
  0x47   : > { %5367 = vst [vmem:[#allocation12_spill] sm:$0xff] %v4504_v60  ;;  %v4515_v21 = vcombine.low %v1197_v16, %v1200_v22  ;;  %v451_v29 = vor.u32 %v450_v58, %v447_v55  ;;  %v456_v30 = vrot.slane %v454_v59, 5  ;;  %3604 = vmatprep.mubr.msk.bf16.mxu0 %vm662_vm3, %v4504_v60  ;;  %3469 = vmatmul.mubr.msk.bf16.gmra.mrb[12].mxu1 %vm662_vm3, %v4504_v60  ;;  %v464_v45 = vshll.u32 %v4501_v51, 16  ;;  %v4632_v60 = vld [vmem:[%s4253_s9 + $0x9c] sm:$0xf] }
  0x48   : > { %v443_v19 = vsel %vm4300_vm4, %v438_v17, %v442_v37  ;;  %v3137_v61 = vrot.slane %v4296_v33, 9  ;;  %v1205_v12 = vrot.slane %v1203_v1, 4  ;;  %v460_v44 = vrot.slane %v458_v35, 4 }
  0x49   : > { %5368 = vst [vmem:[#allocation13_spill] sm:$0xff] %v4515_v21  ;;  %v4531_v40 = vcombine.low %v433_v63, %v443_v19  ;;  %v452_v41 = vrot.slane %v451_v29, 4  ;;  %v469_v16 = vshrl.u32 %v4513_v56, 16  ;;  %v466_v18 = vrot.slane %v464_v45, 5  ;;  %v4560_v29 = vld [vmem:[%s4253_s9 + $0x84] sm:$0xf] }
  0x4a   : > { %v1204_v37 = vsel %vm4481_vm7, %v3137_v61, %v1203_v1  ;;  %v1207_v50 = vsel %vm4481_vm7, %v1205_v12, %v1206_v2  ;;  %v472_v55 = vshll.u32 %v4513_v56, 16  ;;  %v461_v59 = vor.u32 %v460_v44, %v456_v30 }
  0x4b   : > { %5369 = vst [vmem:[#allocation14_spill] sm:$0xff] %v4531_v40  ;;  %3605 = vmatmul.mubr.msk.bf16.gmra.mrb[12].mxu0 %vm662_vm3, %v4531_v40  ;;  %3472 = vmatprep.mubr.msk.bf16.mxu1 %vm662_vm3, %v4531_v40  ;;  %v457_v58 = vsel %vm4300_vm4, %v452_v41, %v456_v30  ;;  %v4552_v63 = vcombine.low %v1204_v37, %v1207_v50  ;;  %v471_v1 = vrot.slane %v469_v16, 4  ;;  %v478_v2 = vshll.u32 %v4529_v31, 16  ;;  %v4566_v16 = vld [vmem:[%s4253_s9 + $0x88] sm:$0xf] }
  0x4c   : > { %3626 = vmatprep.mubr.msk.bf16.mxu0 %vm662_vm3, %v4515_v21  ;;  %v474_v46 = vrot.slane %v472_v55, 5  ;;  %v482_v17 = vshrl.u32 %v4529_v31, 16  ;;  %v488_v22 = vshll.u32 %v4534_v49, 16  ;;  %v462_v35 = vrot.slane %v461_v59, 4 }
  0x4d   : > { %5370 = vst [vmem:[#allocation15_spill] sm:$0xff] %v4552_v63  ;;  %v3138_v30 = vrot.slane %v4323_v57, 9  ;;  %v1210_v19 = vrot.slane %v4328_v62, 5  ;;  %v1213_v45 = vrot.slane %v4336_v4, 5  ;;  %v480_v12 = vrot.slane %v478_v2, 5 }
  0x4e   : > { %v475_v61 = vor.u32 %v474_v46, %v471_v1  ;;  %v484_v41 = vrot.slane %v482_v17, 4  ;;  %v490_v44 = vrot.slane %v488_v22, 5  ;;  %v467_v37 = vsel %vm4300_vm4, %v462_v35, %v466_v18  ;;  %v4576_v1 = vld [vmem:[%s4253_s9 + $0x8c] sm:$0x1] }
  0x4f   : > { %v1211_v50 = vsel %vm4481_vm7, %v3138_v30, %v1210_v19  ;;  %v1212_v55 = vrot.slane %v1210_v19, 4  ;;  %v493_v59 = vshrl.u32 %v4560_v29, 16  ;;  %v4573_v3 = vcombine.low %v457_v58, %v467_v37 }
  0x50   : > { %v476_v40 = vrot.slane %v475_v61, 4  ;;  %v485_v4 = vor.u32 %v484_v41, %v480_v12  ;;  %v496_v46 = vshll.u32 %v4560_v29, 16  ;;  %v502_v18 = vshll.u32 %v4566_v16, 16  ;;  %v4590_v61 = vld [vmem:[%s4253_s9 + $0x90] sm:$0xf] }
  0x51   : > { %5371 = vst [vmem:[#allocation16_spill] sm:$0xff] %v4573_v3  ;;  %v1214_v2 = vsel %vm4481_vm7, %v1212_v55, %v1213_v45  ;;  %v495_v17 = vrot.slane %v493_v59, 4  ;;  %v506_v22 = vshrl.u32 %v4566_v16, 16  ;;  %3473 = vmatmul.mubr.msk.bf16.gmra.mrb[16].mxu1 %vm662_vm3, %v4573_v3  ;;  %v4595_v45 = vld [vmem:[%s5320_s1 + $0xe] sm:$0x3]  ;;  %v1217_v59 = vrot.slane %v4354_v28, 5 }
  0x52   : > { %v481_v58 = vsel %vm4300_vm4, %v476_v40, %v480_v12  ;;  %v486_v35 = vrot.slane %v485_v4, 4  ;;  %v4587_v30 = vcombine.low %v1211_v50, %v1214_v2  ;;  %v498_v19 = vrot.slane %v496_v46, 5  ;;  %5373 = vst [vmem:[#allocation18_spill] sm:$0xff] %v4595_v45  ;;  %v4609_v46 = vld [vmem:[%s4253_s9 + $0x94] sm:$0xf] }
  0x53   : > { %3627 = vmatmul.mubr.msk.bf16.vlgmr.msra.gmra.mrb[0].mxu0 %vm662_vm3, %v4552_v63  ;;  %v504_v41 = vrot.slane %v502_v18, 5  ;;  %v508_v37 = vrot.slane %v506_v22, 4  ;;  %v512_v40 = vshll.u32 %v4576_v1, 16  ;;  %v3139_v12 = vrot.slane %v4342_v14, 9  ;;  %v4614_v3 = vld [vmem:[%s4253_s9 + $0x98] sm:$0x1] }
  0x54   : > { %5372 = vst [vmem:[#allocation17_spill] sm:$0xff] %v4587_v30  ;;  %3659 = vmatpush3.bf16.msra.mxu0 %v4288_v20  ;;  %v491_v50 = vsel %vm4300_vm4, %v486_v35, %v490_v44  ;;  %3630 = vmatprep.mubr.msk.bf16.mxu0 %vm662_vm3, %v4587_v30  ;;  %v499_v55 = vor.u32 %v498_v19, %v495_v17  ;;  %v1220_v4 = vrot.slane %v4361_v32, 5  ;;  %v517_v20 = vshrl.u32 %v4590_v61, 16 }
  0x55   : > { %v4611_v2 = vcombine.low %v481_v58, %v491_v50  ;;  %v509_v18 = vor.u32 %v508_v37, %v504_v41  ;;  %v514_v22 = vrot.slane %v512_v40, 5  ;;  %4026 = vmatprep.subr.msk.bf16.mxu0 %vm711_vm0, %v4595_v45  ;;  %v1218_v17 = vsel %vm4481_vm7, %v3139_v12, %v1217_v59 }
  0x56   : > { %v500_v44 = vrot.slane %v499_v55, 4  ;;  %v1219_v35 = vrot.slane %v1217_v59, 4  ;;  %v520_v32 = vshll.u32 %v4590_v61, 16  ;;  %v519_v19 = vrot.slane %v517_v20, 4 }
  0x57   : > { %5374 = vst [vmem:[#allocation19_spill] sm:$0xff] %v4611_v2  ;;  %3476 = vmatprep.mubr.msk.bf16.mxu1 %vm662_vm3, %v4611_v2  ;;  %v510_v58 = vrot.slane %v509_v18, 4  ;;  %v526_v37 = vshll.u32 %v4609_v46, 16  ;;  %v530_v40 = vshrl.u32 %v4609_v46, 16  ;;  %v536_v59 = vshll.u32 %v4614_v3, 16 }
  0x58   : > { %v505_v50 = vsel %vm4300_vm4, %v500_v44, %v504_v41  ;;  %v1221_v55 = vsel %vm4481_vm7, %v1219_v35, %v1220_v4  ;;  %v522_v12 = vrot.slane %v520_v32, 5  ;;  %v3140_v4 = vrot.slane %v4369_v48, 9 }
  0x59   : > { %v515_v2 = vsel %vm4300_vm4, %v510_v58, %v514_v22  ;;  %v4636_v18 = vcombine.low %v1218_v17, %v1221_v55  ;;  %v528_v20 = vrot.slane %v526_v37, 5  ;;  %v532_v0 = vrot.slane %v530_v40, 4  ;;  %v4652_v58 = vld [vmem:[%s4253_s9 + $0xa4] sm:$0x1] }
  0x5a   : > { %v4641_v43 = vcombine.low %v505_v50, %v515_v2  ;;  %v523_v41 = vor.u32 %v522_v12, %v519_v19  ;;  %v538_v44 = vrot.slane %v536_v59, 5  ;;  %v1224_v32 = vrot.slane %v4377_v52, 5 }
  0x5b   : > { %5375 = vst [vmem:[#allocation20_spill] sm:$0xff] %v4636_v18  ;;  %3631 = vmatmul.mubr.msk.bf16.gmra.mrb[4].mxu0 %vm662_vm3, %v4636_v18  ;;  %v533_v35 = vor.u32 %v532_v0, %v528_v20  ;;  %v1227_v22 = vrot.slane %v4389_v5, 5  ;;  %v541_v17 = vshrl.u32 %v4632_v60, 16  ;;  %v544_v19 = vshll.u32 %v4632_v60, 16 }
  0x5c   : > { %5376 = vst [vmem:[#allocation21_spill] sm:$0xff] %v4641_v43  ;;  %3477 = vmatmul.mubr.msk.bf16.gmra.mrb[20].mxu1 %vm662_vm3, %v4641_v43  ;;  %v524_v2 = vrot.slane %v523_v41, 4  ;;  %v550_v37 = vshll.u32 %v4639_v7, 16  ;;  %v554_v0 = vshrl.u32 %v4639_v7, 16  ;;  %v1225_v5 = vsel %vm4481_vm7, %v3140_v4, %v1224_v32 }
  0x5d   : > { %v534_v40 = vrot.slane %v533_v35, 4  ;;  %v1226_v50 = vrot.slane %v1224_v32, 4  ;;  %v543_v55 = vrot.slane %v541_v17, 4  ;;  %v546_v59 = vrot.slane %v544_v19, 5  ;;  %v4671_v32 = vld [vmem:[%s4253_s9 + $0xac] sm:$0xf] }
  0x5e   : > { %v529_v12 = vsel %vm4300_vm4, %v524_v2, %v528_v20  ;;  %v552_v41 = vrot.slane %v550_v37, 5  ;;  %v556_v43 = vrot.slane %v554_v0, 4  ;;  %v560_v35 = vshll.u32 %v4652_v58, 16 }
  0x5f   : > { %v539_v53 = vsel %vm4300_vm4, %v534_v40, %v538_v44  ;;  %v1228_v18 = vsel %vm4481_vm7, %v1226_v50, %v1227_v22  ;;  %v3141_v4 = vrot.slane %v4394_v13, 9  ;;  %v547_v2 = vor.u32 %v546_v59, %v543_v55 }
  0x60   : > { %v4673_v17 = vcombine.low %v529_v12, %v539_v53  ;;  %v4675_v20 = vcombine.low %v1225_v5, %v1228_v18  ;;  %v557_v19 = vor.u32 %v556_v43, %v552_v41  ;;  %v562_v37 = vrot.slane %v560_v35, 5  ;;  %v4685_v18 = vld [vmem:[%s4253_s9 + $0xb0] sm:$0x1] }
  0x61   : > { %v1231_v0 = vrot.slane %v4401_v24, 5  ;;  %v1234_v44 = vrot.slane %v4418_v8, 5  ;;  %v565_v22 = vshrl.u32 %v4662_v25, 16  ;;  %v548_v53 = vrot.slane %v547_v2, 4 }
  0x62   : > { %5377 = vst [vmem:[#allocation22_spill] sm:$0xff] %v4673_v17  ;;  %5378 = vst [vmem:[#allocation23_spill] sm:$0xff] %v4675_v20  ;;  %3480 = vmatprep.mubr.msk.bf16.mxu1 %vm662_vm3, %v4673_v17  ;;  %3634 = vmatprep.mubr.msk.bf16.mxu0 %vm662_vm3, %v4675_v20  ;;  %v558_v40 = vrot.slane %v557_v19, 4  ;;  %v568_v43 = vshll.u32 %v4662_v25, 16  ;;  %v574_v5 = vshll.u32 %v4671_v32, 16  ;;  %v578_v12 = vshrl.u32 %v4671_v32, 16 }
  0x63   : > { %v1232_v8 = vsel %vm4481_vm7, %v3141_v4, %v1231_v0  ;;  %v1233_v50 = vrot.slane %v1231_v0, 4  ;;  %v567_v55 = vrot.slane %v565_v22, 4  ;;  %v553_v59 = vsel %vm4300_vm4, %v548_v53, %v552_v41  ;;  %v4697_v17 = vld [vmem:[%s4253_s9 + $0xb4] sm:$0xf]  ;;  %v4709_v53 = vld [vmem:[%s4253_s9 + $0xb8] sm:$0xf] }
  0x64   : > { %v563_v35 = vsel %vm4300_vm4, %v558_v40, %v562_v37  ;;  %v570_v2 = vrot.slane %v568_v43, 5  ;;  %v576_v19 = vrot.slane %v574_v5, 5  ;;  %v580_v0 = vrot.slane %v578_v12, 4 }
  0x65   : > { %v4699_v20 = vcombine.low %v553_v59, %v563_v35  ;;  %v1235_v4 = vsel %vm4481_vm7, %v1233_v50, %v1234_v44  ;;  %v584_v22 = vshll.u32 %v4685_v18, 16  ;;  %v3142_v41 = vrot.slane %v4423_v42, 9  ;;  %v4715_v44 = vld [vmem:[%s4253_s9 + $0xbc] sm:$0x1] }
  0x66   : > { %v4704_v30 = vcombine.low %v1232_v8, %v1235_v4  ;;  %v571_v63 = vor.u32 %v570_v2, %v567_v55  ;;  %v1238_v37 = vrot.slane %v4428_v6, 5  ;;  %v581_v40 = vor.u32 %v580_v0, %v576_v19 }
  0x67   : > { %5379 = vst [vmem:[#allocation24_spill] sm:$0xff] %v4699_v20  ;;  %3481 = vmatmul.mubr.msk.bf16.gmra.mrb[24].mxu1 %vm662_vm3, %v4699_v20  ;;  %v586_v43 = vrot.slane %v584_v22, 5  ;;  %v1241_v5 = vrot.slane %v4441_v11, 5  ;;  %v589_v50 = vshrl.u32 %v4697_v17, 16  ;;  %v592_v59 = vshll.u32 %v4697_v17, 16 }
  0x68   : > { %5380 = vst [vmem:[#allocation25_spill] sm:$0xff] %v4704_v30  ;;  %3635 = vmatmul.mubr.msk.bf16.gmra.mrb[8].mxu0 %vm662_vm3, %v4704_v30  ;;  %v572_v8 = vrot.slane %v571_v63, 4  ;;  %v1239_v55 = vsel %vm4481_vm7, %v3142_v41, %v1238_v37  ;;  %v1240_v12 = vrot.slane %v1238_v37, 4  ;;  %v582_v35 = vrot.slane %v581_v40, 4 }
  0x69   : > { %v591_v2 = vrot.slane %v589_v50, 4  ;;  %v598_v4 = vshll.u32 %v4709_v53, 16  ;;  %v602_v11 = vshrl.u32 %v4709_v53, 16  ;;  %v594_v20 = vrot.slane %v592_v59, 5 }
  0x6a   : > { %v577_v0 = vsel %vm4300_vm4, %v572_v8, %v576_v19  ;;  %v1242_v22 = vsel %vm4481_vm7, %v1240_v12, %v1241_v5  ;;  %v608_v63 = vshll.u32 %v4715_v44, 16  ;;  %v587_v41 = vsel %vm4300_vm4, %v582_v35, %v586_v43 }
  0x6b   : > { %v4732_v37 = vcombine.low %v1239_v55, %v1242_v22  ;;  %v600_v40 = vrot.slane %v598_v4, 5  ;;  %v604_v50 = vrot.slane %v602_v11, 4  ;;  %v4734_v30 = vcombine.low %v577_v0, %v587_v41 }
  0x6c   : > { %v595_v21 = vor.u32 %v594_v20, %v591_v2  ;;  %v610_v45 = vrot.slane %v608_v63, 5  ;;  %v3143_v42 = vrot.slane %v4445_v15, 9  ;;  %v1245_v5 = vrot.slane %v4450_v27, 5 }
  0x6d   : > { %3638 = vmatprep.mubr.msk.bf16.mxu0 %vm662_vm3, %v4732_v37  ;;  %v605_v19 = vor.u32 %v604_v50, %v600_v40  ;;  %v1248_v8 = vrot.slane %v4464_v47, 5  ;;  %v3144_v43 = vrot.slane %v4472_v54, 9  ;;  %3484 = vmatprep.mubr.msk.bf16.mxu1 %vm662_vm3, %v4734_v30  ;;  %v3103_v20 = vcombine.low %v4267_v9, %v4270_v10 }
  0x6e   : > { %v596_v55 = vrot.slane %v595_v21, 4  ;;  %v1252_v12 = vrot.slane %v4488_v36, 5  ;;  %v1255_v59 = vrot.slane %v4501_v51, 5  ;;  %v1246_v2 = vsel %vm4481_vm7, %v3143_v42, %v1245_v5 }
  0x6f   : > { %v606_v35 = vrot.slane %v605_v19, 4  ;;  %v1247_v4 = vrot.slane %v1245_v5, 4  ;;  %v1259_v47 = vrot.slane %v4529_v31, 5  ;;  %v3145_v9 = vrot.slane %v4513_v56, 9 }
  0x70   : > { %v601_v11 = vsel %vm4300_vm4, %v596_v55, %v600_v40  ;;  %v1253_v21 = vsel %vm4481_vm7, %v3144_v43, %v1252_v12  ;;  %v1254_v0 = vrot.slane %v1252_v12, 4  ;;  %v1262_v42 = vrot.slane %v4534_v49, 5 }
  0x71   : > { %v611_v10 = vsel %vm4300_vm4, %v606_v35, %v610_v45  ;;  %v1249_v51 = vsel %vm4481_vm7, %v1247_v4, %v1248_v8  ;;  %v1261_v22 = vrot.slane %v1259_v47, 4  ;;  %v3146_v19 = vrot.slane %v4560_v29, 9 }
  0x72   : > { %v4761_v63 = vcombine.low %v601_v11, %v611_v10  ;;  %v4763_v41 = vcombine.low %v1246_v2, %v1249_v51  ;;  %v1256_v40 = vsel %vm4481_vm7, %v1254_v0, %v1255_v59  ;;  %v1266_v5 = vrot.slane %v4566_v16, 5 }
  0x73   : > { %v4767_v50 = vcombine.low %v1253_v21, %v1256_v40  ;;  %v1269_v49 = vrot.slane %v4576_v1, 5  ;;  %v1260_v45 = vsel %vm4481_vm7, %v3145_v9, %v1259_v47  ;;  %v1263_v8 = vsel %vm4481_vm7, %v1261_v22, %v1262_v42 }
  0x74   : > { %3485 = vmatmul.mubr.msk.bf16.gmra.mrb[28].mxu1 %vm662_vm3, %v4761_v63  ;;  %3639 = vmatmul.mubr.msk.bf16.gmra.mrb[12].mxu0 %vm662_vm3, %v4763_v41  ;;  %v1268_v43 = vrot.slane %v1266_v5, 4  ;;  %v1273_v55 = vrot.slane %v4609_v46, 5  ;;  %v1280_v12 = vrot.slane %v4639_v7, 5  ;;  %v1267_v59 = vsel %vm4481_vm7, %v3146_v19, %v1266_v5 }
  0x75   : > { %3490 = vmatprep.mubr.msk.bf16.mxu1 %vm662_vm3, %v3103_v20  ;;  %3642 = vmatprep.mubr.msk.bf16.mxu0 %vm662_vm3, %v4767_v50  ;;  %v4789_v20 = vcombine.low %v1260_v45, %v1263_v8  ;;  %v3147_v35 = vrot.slane %v4590_v61, 9  ;;  %v1276_v4 = vrot.slane %v4614_v3, 5  ;;  %v4795_v47 = vcombine.low %v4296_v33, %v4309_v39  ;;  %v4807_v3 = vld [vmem:[%s5320_s1 + $0x6] sm:$0x3] }
  0x76   : > { %v1270_v1 = vsel %vm4481_vm7, %v1268_v43, %v1269_v49  ;;  %v1275_v2 = vrot.slane %v1273_v55, 4  ;;  %v3148_v11 = vrot.slane %v4632_v60, 9  ;;  %v1398_v21 = vsel %vm711_vm0, %v4349_v23, 0 }
  0x77   : > { %v4800_v0 = vcombine.low %v1267_v59, %v1270_v1  ;;  %v1282_v9 = vrot.slane %v1280_v12, 4  ;;  %v1283_v10 = vrot.slane %v4652_v58, 5  ;;  %v1287_v51 = vrot.slane %v4671_v32, 5 }
  0x78   : > { %v1274_v33 = vsel %vm4481_vm7, %v3147_v35, %v1273_v55  ;;  %v1277_v39 = vsel %vm4481_vm7, %v1275_v2, %v1276_v4  ;;  %v4821_v23 = vcombine.low %v4323_v57, %v4328_v62  ;;  %v1281_v58 = vsel %vm4481_vm7, %v3148_v11, %v1280_v12 }
  0x79   : > { %v4827_v22 = vcombine.low %v4445_v15, %v4450_v27  ;;  %v1284_v42 = vsel %vm4481_vm7, %v1282_v9, %v1283_v10  ;;  %v3149_v40 = vrot.slane %v4662_v25, 9  ;;  %v1294_v19 = vrot.slane %v4709_v53, 5 }
  0x7a   : > { %v4837_v57 = vcombine.low %v4472_v54, %v4488_v36  ;;  %v4841_v62 = vcombine.low %v1274_v33, %v1277_v39  ;;  %v1289_v15 = vrot.slane %v1287_v51, 4  ;;  %v1290_v27 = vrot.slane %v4685_v18, 5  ;;  %v220_v18 = vld [vmem:[%s4253_s9 + $0xc8] sm:$0x1] }
  0x7b   : > { %v4846_v5 = vcombine.low %v4513_v56, %v4529_v31  ;;  %v4850_v49 = vcombine.low %v4560_v29, %v4566_v16  ;;  %v4854_v54 = vcombine.low %v4590_v61, %v4609_v46  ;;  %v4858_v36 = vcombine.low %v4632_v60, %v4639_v7  ;;  %v4877_v61 = vld [vmem:[%s4253_s9 + $0xc4] sm:$0xf] }
  0x7c   : > { %3491 = vmatmul.mubr.msk.bf16.vlgmr.msra.gmra.mrb[0].mxu1 %vm662_vm3, %v4306_v38  ;;  %3643 = vmatmul.mubr.msk.bf16.gmra.mrb[16].mxu0 %vm662_vm3, %v4789_v20  ;;  %v4862_v45 = vcombine.low %v4662_v25, %v4671_v32  ;;  %v4866_v56 = vcombine.low %v4342_v14, %v4354_v28  ;;  %v4868_v31 = vcombine.low %v1281_v58, %v1284_v42  ;;  %v3150_v16 = vrot.slane %v4697_v17, 9  ;;  %v5381_v42 = vld [vmem:[#allocation8_spill] sm:$0xff] }
  0x7d   : > { %3523 = vmatpush3.bf16.msra.mxu1 %v1398_v21  ;;  %3494 = vmatprep.mubr.msk.bf16.mxu1 %vm662_vm3, %v4795_v47  ;;  %v4872_v29 = vcombine.low %v4697_v17, %v4709_v53  ;;  %v1296_v7 = vrot.slane %v1294_v19, 4  ;;  %v1297_v60 = vrot.slane %v4715_v44, 5  ;;  %v1288_v14 = vsel %vm4481_vm7, %v3149_v40, %v1287_v51  ;;  %v4897_v17 = vld [vmem:[%s4253_s9 + $0xc0] sm:$0xf] }
  0x7e   : > { %3646 = vmatprep.mubr.msk.bf16.mxu0 %vm662_vm3, %v4800_v0  ;;  %4021 = vmatprep.subr.msk.bf16.mxu1 %vm711_vm0, %v4807_v3  ;;  %v1291_v28 = vsel %vm4481_vm7, %v1289_v15, %v1290_v27  ;;  %v2030_v25 = vrot.slane %v4877_v61, 5  ;;  %v1295_v46 = vsel %vm4481_vm7, %v3150_v16, %v1294_v19  ;;  %v4902_v53 = vcombine.low %v4369_v48, %v4377_v52 }
  0x7f   : > { %v1298_v32 = vsel %vm4481_vm7, %v1296_v7, %v1297_v60  ;;  %v4904_v44 = vcombine.low %v1288_v14, %v1291_v28  ;;  %v4908_v8 = vcombine.low %v4394_v13, %v4401_v24  ;;  %v1800_v43 = vshrl.u32 %v4897_v17, 16  ;;  %v3276_v60 = vld [vmem:[%s5320_s1 + $0x10] sm:$0x3]  ;;  %v4088_v14 = vld [vmem:[%s4253_s9 + $0x4] sm:$0xf] }
  0x80   : > { %v1803_v55 = vshll.u32 %v4897_v17, 16  ;;  %v1809_v12 = vshll.u32 %v4877_v61, 16  ;;  %v1813_v59 = vshrl.u32 %v4877_v61, 16  ;;  %v4914_v1 = vcombine.low %v1295_v46, %v1298_v32  ;;  %v4090_v32 = vld [vmem:[%s4253_s9] sm:$0xf] }
  0x81   : > { %v3220_v35 = vrot.slane %v4897_v17, 9  ;;  %v2032_v48 = vrot.slane %v2030_v25, 4  ;;  %v2033_v52 = vrot.slane %v220_v18, 5  ;;  %v1802_v2 = vrot.slane %v1800_v43, 4 }
  0x82   : > { %v1805_v4 = vrot.slane %v1803_v55, 5  ;;  %v1811_v11 = vrot.slane %v1809_v12, 5  ;;  %v1815_v21 = vrot.slane %v1813_v59, 4  ;;  %v1819_v9 = vshll.u32 %v220_v18, 16 }
  0x83   : > { %v2031_v10 = vsel %vm4481_vm7, %v3220_v35, %v2030_v25  ;;  %v2034_v51 = vsel %vm4481_vm7, %v2032_v48, %v2033_v52  ;;  %v4931_v40 = vcombine.low %v5381_v42, %v4428_v6  ;;  %v5382_v6 = vld [vmem:[#allocation18_spill] sm:$0xff]  ;;  %v1189_v28 = vrot.slane %v4088_v14, 5  ;;  %v4089_v25 = vld [vmem:[%s4253_s9 + $0x8] sm:$0x1]  ;;  %v5383_v48 = vld [vmem:[#allocation13_spill] sm:$0xff] }
  0x84   : > { %3495 = vmatmul.mubr.msk.bf16.gmra.mrb[4].mxu1 %vm662_vm3, %v4821_v23  ;;  %3647 = vmatmul.mubr.msk.bf16.gmra.mrb[20].mxu0 %vm662_vm3, %v4841_v62  ;;  %v1806_v13 = vor.u32 %v1805_v4, %v1802_v2  ;;  %v1816_v24 = vor.u32 %v1815_v21, %v1811_v11  ;;  %v1821_v58 = vrot.slane %v1819_v9, 5  ;;  %v4933_v19 = vcombine.low %v2031_v10, %v2034_v51  ;;  %v5384_v52 = vld [vmem:[#allocation15_spill] sm:$0xff]  ;;  %v4091_v2 = vld [vmem:[%s5320_s1 + $0x8] sm:$0x3]  ;;  %v5031_v9 = vld [vmem:[%s4253_s9 + $0xd0] sm:$0xf] }
  0x85   : > { %3498 = vmatprep.mubr.msk.bf16.mxu1 %vm662_vm3, %v4866_v56  ;;  %3650 = vmatprep.mubr.msk.bf16.mxu0 %vm662_vm3, %v4868_v31  ;;  %v2478_v7 = vsel %vm711_vm0, %v5382_v6, 0  ;;  %v1192_v46 = vrot.slane %v4089_v25, 5  ;;  %v3135_v18 = vrot.slane %v4090_v32, 9  ;;  %v1191_v43 = vrot.slane %v1189_v28, 4  ;;  %v5386_v4 = vld [vmem:[#allocation20_spill] sm:$0xff]  ;;  %v5387_v21 = vld [vmem:[#allocation23_spill] sm:$0xff] }
  0x86   : > { %v1807_v33 = vrot.slane %v1806_v13, 4  ;;  %v1817_v39 = vrot.slane %v1816_v24, 4  ;;  %v1604_v35 = vsel %vm711_vm0, %v4807_v3, 0  ;;  %v5385_v3 = vld [vmem:[#allocation17_spill] sm:$0xff]  ;;  %v5028_v24 = vld [vmem:[%s4253_s9 + $0xcc] sm:$0xf] }
  0x87   : > { %v1190_v55 = vsel %vm4481_vm7, %v3135_v18, %v1189_v28  ;;  %v1193_v12 = vsel %vm4481_vm7, %v1191_v43, %v1192_v46  ;;  %v5388_v13 = vld [vmem:[#allocation25_spill] sm:$0xff]  ;;  %v2690_v10 = vsel %vm711_vm0, %v3276_v60, 0  ;;  %v5390_v51 = vld [vmem:[#allocation7_spill] sm:$0xff]  ;;  %v5394_v42 = vld [vmem:[#allocation12_spill] sm:$0xff]  ;;  %v2449_v14 = vshll.u32 %v5028_v24, 16 }
  0x88   : > { %v1812_v15 = vsel %vm4300_vm4, %v1807_v33, %v1811_v11  ;;  %v1822_v27 = vsel %vm4300_vm4, %v1817_v39, %v1821_v58  ;;  %v3152_v59 = vcombine.low %v1190_v55, %v1193_v12  ;;  %v5017_v11 = vcombine.low %v4897_v17, %v4877_v61  ;;  %v5389_v17 = vld [vmem:[#allocation6_spill] sm:$0xff]  ;;  %v5391_v33 = vld [vmem:[#allocation9_spill] sm:$0xff]  ;;  %v5393_v58 = vld [vmem:[#allocation11_spill] sm:$0xff] }
  0x89   : > { %v4939_v16 = vcombine.low %v1812_v15, %v1822_v27  ;;  %v3240_v61 = vcombine.low %v5028_v24, %v5031_v9  ;;  %v5392_v39 = vld [vmem:[#allocation10_spill] sm:$0xff]  ;;  %v5396_v27 = vld [vmem:[#allocation16_spill] sm:$0xff]  ;;  %v5397_v6 = vld [vmem:[#allocation19_spill] sm:$0xff]  ;;  %v2459_v28 = vshrl.u32 %v5031_v9, 16  ;;  %v2451_v32 = vrot.slane %v2449_v14, 5 }
  0x8a   : > { %v5395_v15 = vld [vmem:[#allocation14_spill] sm:$0xff]  ;;  %v5399_v25 = vld [vmem:[#allocation5_spill] sm:$0xff]  ;;  %v5401_v12 = vld [vmem:[#allocation24_spill] sm:$0xff]  ;;  %v2676_v34 = vrot.slane %v5031_v9, 5 }
  0x8b   : > { %v5400_v46 = vld [vmem:[#allocation22_spill] sm:$0xff]  ;;  %v2461_v43 = vrot.slane %v2459_v28, 4  ;;  %v223_v55 = vld [vmem:[%s4253_s9 + $0xd4] sm:$0x1]  ;;  %s3300_s9 = sshll.u32 %s4200_s16, 12  ;;  %s5278_s16 = scalar_lea.sflag [#allocation3], %s161_s4 }
  0x8c   : > { %3499 = vmatmul.mubr.msk.bf16.gmra.mrb[8].mxu1 %vm662_vm3, %v4902_v53  ;;  %3651 = vmatmul.mubr.msk.bf16.gmra.mrb[24].mxu0 %vm662_vm3, %v4904_v44  ;;  %s5269_s19 = scalar_lea.hbm %s5322_s3, %s3300_s9 }
  0x8d   : > { %3502 = vmatprep.mubr.msk.bf16.mxu1 %vm662_vm3, %v4908_v8  ;;  %3654 = vmatprep.mubr.msk.bf16.mxu0 %vm662_vm3, %v4914_v1 }
  0x94   : > { %3503 = vmatmul.mubr.msk.bf16.gmra.mrb[12].mxu1 %vm662_vm3, %v4931_v40  ;;  %3655 = vmatmul.mubr.msk.bf16.gmra.mrb[28].mxu0 %vm662_vm3, %v4933_v19 }
  0x95   : > { %3506 = vmatprep.mubr.msk.bf16.mxu1 %vm662_vm3, %v4827_v22  ;;  %3660 = vmatprep.mubr.msk.bf16.mxu0 %vm662_vm3, %v4795_v47 }
  0x9c   : > { %3507 = vmatmul.mubr.msk.bf16.gmra.mrb[16].mxu1 %vm662_vm3, %v4837_v57  ;;  %3661 = vmatmul.mubr.msk.bf16.vlgmr.msra.gmra.mrb[0].mxu0 %vm662_vm3, %v4821_v23 }
  0x9d   : > { %3693 = vmatpush3.bf16.msra.mxu0 %v2478_v7  ;;  %3510 = vmatprep.mubr.msk.bf16.mxu1 %vm662_vm3, %v4846_v5  ;;  %v5398_v7 = vld [vmem:[#allocation21_spill] sm:$0xff] }
  0x9e   : > { %3664 = vmatprep.mubr.msk.bf16.mxu0 %vm662_vm3, %v4866_v56  ;;  %4027 = vmatprep.subr.msk.bf16.mxu0 %vm711_vm0, %v3276_v60  ;;  %v2446_v60 = vshrl.u32 %v5028_v24, 16 }
  0xa4   : > { %3511 = vmatmul.mubr.msk.bf16.gmra.mrb[20].mxu1 %vm662_vm3, %v4850_v49  ;;  %3665 = vmatmul.mubr.msk.bf16.gmra.mrb[4].mxu0 %vm662_vm3, %v4902_v53 }
  0xa5   : > { %3514 = vmatprep.mubr.msk.bf16.mxu1 %vm662_vm3, %v4854_v54  ;;  %3668 = vmatprep.mubr.msk.bf16.mxu0 %vm662_vm3, %v4908_v8 }
  0xac   : > { %3515 = vmatmul.mubr.msk.bf16.gmra.mrb[24].mxu1 %vm662_vm3, %v4858_v36  ;;  %3669 = vmatmul.mubr.msk.bf16.gmra.mrb[8].mxu0 %vm662_vm3, %v4931_v40 }
  0xad   : > { %3518 = vmatprep.mubr.msk.bf16.mxu1 %vm662_vm3, %v4862_v45  ;;  %3672 = vmatprep.mubr.msk.bf16.mxu0 %vm662_vm3, %v4827_v22 }
  0xb4   : > { %3519 = vmatmul.mubr.msk.bf16.gmra.mrb[28].mxu1 %vm662_vm3, %v4872_v29  ;;  %3673 = vmatmul.mubr.msk.bf16.gmra.mrb[12].mxu0 %vm662_vm3, %v4837_v57 }
  0xb5   : > { %3524 = vmatprep.mubr.msk.bf16.mxu1 %vm662_vm3, %v3152_v59  ;;  %3676 = vmatprep.mubr.msk.bf16.mxu0 %vm662_vm3, %v4846_v5 }
  0xbc   : > { %3525 = vmatmul.mubr.msk.bf16.vlgmr.msra.gmra.mrb[0].mxu1 %vm662_vm3, %v5383_v48  ;;  %3677 = vmatmul.mubr.msk.bf16.gmra.mrb[16].mxu0 %vm662_vm3, %v4850_v49 }
  0xbd   : > { %3557 = vmatpush3.bf16.msra.mxu1 %v1604_v35  ;;  %3528 = vmatprep.mubr.msk.bf16.mxu1 %vm662_vm3, %v5384_v52  ;;  %v2465_v35 = vshll.u32 %v223_v55, 16 }
  0xbe   : > { %3680 = vmatprep.mubr.msk.bf16.mxu0 %vm662_vm3, %v4854_v54  ;;  %4023 = vmatprep.subr.msk.bf16.mxu1 %vm711_vm0, %v4091_v2 }
  0xc4   : > { %3529 = vmatmul.mubr.msk.bf16.gmra.mrb[4].mxu1 %vm662_vm3, %v5385_v3  ;;  %3681 = vmatmul.mubr.msk.bf16.gmra.mrb[20].mxu0 %vm662_vm3, %v4858_v36 }
  0xc5   : > { %3532 = vmatprep.mubr.msk.bf16.mxu1 %vm662_vm3, %v5386_v4  ;;  %3684 = vmatprep.mubr.msk.bf16.mxu0 %vm662_vm3, %v4862_v45 }
  0xcc   : > { %3533 = vmatmul.mubr.msk.bf16.gmra.mrb[8].mxu1 %vm662_vm3, %v5387_v21  ;;  %3685 = vmatmul.mubr.msk.bf16.gmra.mrb[24].mxu0 %vm662_vm3, %v4872_v29 }
  0xcd   : > { %3536 = vmatprep.mubr.msk.bf16.mxu1 %vm662_vm3, %v5388_v13  ;;  %3688 = vmatprep.mubr.msk.bf16.mxu0 %vm662_vm3, %v5017_v11 }
  0xd4   : > { %3537 = vmatmul.mubr.msk.bf16.gmra.mrb[12].mxu1 %vm662_vm3, %v4732_v37  ;;  %3689 = vmatmul.mubr.msk.bf16.gmra.mrb[28].mxu0 %vm662_vm3, %v3240_v61  ;;  %v2467_v61 = vrot.slane %v2465_v35, 5 }
  0xd5   : > { %3540 = vmatprep.mubr.msk.bf16.mxu1 %vm662_vm3, %v4763_v41  ;;  %3694 = vmatprep.mubr.msk.bf16.mxu0 %vm662_vm3, %v5389_v17 }
  0xdc   : > { %3541 = vmatmul.mubr.msk.bf16.gmra.mrb[16].mxu1 %vm662_vm3, %v4767_v50  ;;  %3695 = vmatmul.mubr.msk.bf16.vlgmr.msra.gmra.mrb[0].mxu0 %vm662_vm3, %v5390_v51 }
  0xdd   : > { %3727 = vmatpush3.bf16.msra.mxu0 %v2690_v10  ;;  %3544 = vmatprep.mubr.msk.bf16.mxu1 %vm662_vm3, %v4789_v20 }
  0xde   : > { %3698 = vmatprep.mubr.msk.bf16.mxu0 %vm662_vm3, %v5391_v33 }
  0xe4   : > { %3545 = vmatmul.mubr.msk.bf16.gmra.mrb[20].mxu1 %vm662_vm3, %v4800_v0  ;;  %3699 = vmatmul.mubr.msk.bf16.gmra.mrb[4].mxu0 %vm662_vm3, %v5392_v39 }
  0xe5   : > { %3548 = vmatprep.mubr.msk.bf16.mxu1 %vm662_vm3, %v4841_v62  ;;  %3702 = vmatprep.mubr.msk.bf16.mxu0 %vm662_vm3, %v5393_v58 }
  0xec   : > { %3549 = vmatmul.mubr.msk.bf16.gmra.mrb[24].mxu1 %vm662_vm3, %v4868_v31  ;;  %3703 = vmatmul.mubr.msk.bf16.gmra.mrb[8].mxu0 %vm662_vm3, %v5394_v42 }
  0xed   : > { %3552 = vmatprep.mubr.msk.bf16.mxu1 %vm662_vm3, %v4904_v44  ;;  %3706 = vmatprep.mubr.msk.bf16.mxu0 %vm662_vm3, %v5395_v15 }
  0xf4   : > { %3553 = vmatmul.mubr.msk.bf16.gmra.mrb[28].mxu1 %vm662_vm3, %v4914_v1  ;;  %3707 = vmatmul.mubr.msk.bf16.gmra.mrb[12].mxu0 %vm662_vm3, %v5396_v27 }
  0xf5   : > { %3558 = vmatprep.mubr.msk.bf16.mxu1 %vm662_vm3, %v4306_v38  ;;  %3710 = vmatprep.mubr.msk.bf16.mxu0 %vm662_vm3, %v5397_v6  ;;  %v2455_v38 = vshll.u32 %v5031_v9, 16 }
  0xf7   : > { %v2457_v18 = vrot.slane %v2455_v38, 5 }
  0xf9   : > { %v2462_v59 = vor.u32 %v2461_v43, %v2457_v18 }
  0xfb   : > { %v2463_v2 = vrot.slane %v2462_v59, 4 }
  0xfc   : > { %3559 = vmatmul.mubr.msk.bf16.vlgmr.msra.gmra.mrb[0].mxu1 %vm662_vm3, %v4795_v47  ;;  %3711 = vmatmul.mubr.msk.bf16.gmra.mrb[16].mxu0 %vm662_vm3, %v5398_v7  ;;  %v2448_v47 = vrot.slane %v2446_v60, 4 }
  0xfd   : > { %3761 = vmatpush3.bf16.msra.mxu1 %v5399_v25  ;;  %3562 = vmatprep.mubr.msk.bf16.mxu1 %vm662_vm3, %v4821_v23 }
  0xfe   : > { %3714 = vmatprep.mubr.msk.bf16.mxu0 %vm662_vm3, %v5400_v46  ;;  %v2452_v23 = vor.u32 %v2451_v32, %v2448_v47 }
 0x100   : > { %v2453_v48 = vrot.slane %v2452_v23, 4 }
 0x104   : > { %3563 = vmatmul.mubr.msk.bf16.gmra.mrb[4].mxu1 %vm662_vm3, %v4866_v56  ;;  %3715 = vmatmul.mubr.msk.bf16.gmra.mrb[20].mxu0 %vm662_vm3, %v5401_v12  ;;  %v2458_v56 = vsel %vm4300_vm4, %v2453_v48, %v2457_v18 }
 0x105   : > { %3566 = vmatprep.mubr.msk.bf16.mxu1 %vm662_vm3, %v4902_v53  ;;  %3718 = vmatprep.mubr.msk.bf16.mxu0 %vm662_vm3, %v4734_v30  ;;  %v2468_v53 = vsel %vm4300_vm4, %v2463_v2, %v2467_v61 }
 0x106   : > { %v3258_v17 = vcombine.low %v2458_v56, %v2468_v53 }
 0x10c   : > { %3567 = vmatmul.mubr.msk.bf16.gmra.mrb[8].mxu1 %vm662_vm3, %v4908_v8  ;;  %3719 = vmatmul.mubr.msk.bf16.gmra.mrb[24].mxu0 %vm662_vm3, %v4761_v63 }
 0x10d   : > { %3570 = vmatprep.mubr.msk.bf16.mxu1 %vm662_vm3, %v4931_v40  ;;  %3722 = vmatprep.mubr.msk.bf16.mxu0 %vm662_vm3, %v4939_v16 }
 0x114   : > { %3571 = vmatmul.mubr.msk.bf16.gmra.mrb[12].mxu1 %vm662_vm3, %v4827_v22  ;;  %3723 = vmatmul.mubr.msk.bf16.gmra.mrb[28].mxu0 %vm662_vm3, %v3258_v17 }
 0x115   : > { %3574 = vmatprep.mubr.msk.bf16.mxu1 %vm662_vm3, %v4837_v57  ;;  %3728 = vmatprep.mubr.msk.bf16.mxu0 %vm662_vm3, %v5384_v52 }
 0x11c   : > { %3575 = vmatmul.mubr.msk.bf16.gmra.mrb[16].mxu1 %vm662_vm3, %v4846_v5  ;;  %3729 = vmatmul.mubr.msk.bf16.vlgmr.msra.gmra.mrb[0].mxu0 %vm662_vm3, %v5385_v3 }
 0x11d   : > { %3578 = vmatprep.mubr.msk.bf16.mxu1 %vm662_vm3, %v4850_v49  ;;  %3732 = vmatprep.mubr.msk.bf16.mxu0 %vm662_vm3, %v5386_v4 }
 0x124   : > { %3579 = vmatmul.mubr.msk.bf16.gmra.mrb[20].mxu1 %vm662_vm3, %v4854_v54  ;;  %3733 = vmatmul.mubr.msk.bf16.gmra.mrb[4].mxu0 %vm662_vm3, %v5387_v21 }
 0x125   : > { %3582 = vmatprep.mubr.msk.bf16.mxu1 %vm662_vm3, %v4858_v36  ;;  %3736 = vmatprep.mubr.msk.bf16.mxu0 %vm662_vm3, %v5388_v13 }
 0x12c   : > { %3583 = vmatmul.mubr.msk.bf16.gmra.mrb[24].mxu1 %vm662_vm3, %v4862_v45  ;;  %3737 = vmatmul.mubr.msk.bf16.gmra.mrb[8].mxu0 %vm662_vm3, %v4732_v37  ;;  %v3275_v37 = vrot.slane %v5028_v24, 9 }
 0x12d   : > { %3586 = vmatprep.mubr.msk.bf16.mxu1 %vm662_vm3, %v4872_v29  ;;  %3740 = vmatprep.mubr.msk.bf16.mxu0 %vm662_vm3, %v4763_v41  ;;  %v2678_v41 = vrot.slane %v2676_v34, 4 }
 0x134   : > { %3587 = vmatmul.mubr.msk.bf16.gmra.mrb[28].mxu1 %vm662_vm3, %v5017_v11  ;;  %3741 = vmatmul.mubr.msk.bf16.gmra.mrb[12].mxu0 %vm662_vm3, %v4767_v50  ;;  %v2679_v50 = vrot.slane %v223_v55, 5 }
 0x135   : > { %3608 = vmatprep.mubr.msk.bf16.mxu1 %vm662_vm3, %v5396_v27  ;;  %3744 = vmatprep.mubr.msk.bf16.mxu0 %vm662_vm3, %v4789_v20  ;;  %v2677_v20 = vsel %vm4481_vm7, %v3275_v37, %v2676_v34 }
 0x13c   : > { %3609 = vmatmul.mubr.msk.bf16.vlgmr.msra.gmra.mrb[16].mxu1 %vm662_vm3, %v5397_v6  ;;  %3745 = vmatmul.mubr.msk.bf16.gmra.mrb[16].mxu0 %vm662_vm3, %v4800_v0  ;;  %v2680_v0 = vsel %vm4481_vm7, %v2678_v41, %v2679_v50 }
 0x13d   : > { %3612 = vmatprep.mubr.msk.bf16.mxu1 %vm662_vm3, %v5398_v7  ;;  %3748 = vmatprep.mubr.msk.bf16.mxu0 %vm662_vm3, %v4841_v62  ;;  %v3277_v22 = vcombine.low %v2677_v20, %v2680_v0 }
 0x144   : > { %3613 = vmatmul.mubr.msk.bf16.gmra.mrb[20].mxu1 %vm662_vm3, %v5400_v46  ;;  %3749 = vmatmul.mubr.msk.bf16.gmra.mrb[20].mxu0 %vm662_vm3, %v4868_v31 }
 0x145   : > { %3616 = vmatprep.mubr.msk.bf16.mxu1 %vm662_vm3, %v5401_v12  ;;  %3752 = vmatprep.mubr.msk.bf16.mxu0 %vm662_vm3, %v4904_v44 }
 0x14c   : > { %3617 = vmatmul.mubr.msk.bf16.gmra.mrb[24].mxu1 %vm662_vm3, %v4734_v30  ;;  %3753 = vmatmul.mubr.msk.bf16.gmra.mrb[24].mxu0 %vm662_vm3, %v4914_v1 }
 0x14d   : > { %3620 = vmatprep.mubr.msk.bf16.mxu1 %vm662_vm3, %v4761_v63  ;;  %3756 = vmatprep.mubr.msk.bf16.mxu0 %vm662_vm3, %v4933_v19 }
 0x154   : > { %3621 = vmatmul.mubr.msk.bf16.gmra.mrb[28].mxu1 %vm662_vm3, %v4939_v16  ;;  %3757 = vmatmul.mubr.msk.bf16.gmra.mrb[28].mxu0 %vm662_vm3, %v3277_v22  ;;  %v5193_v16 = vld [vmem:[%s5321_s2] ss:$0 sm:$0xff] }
 0x1cf   : > { %v3560_v30 = vpop.f32.mrb[0].mxu1 }
 0x1d0   : > { %v1640_v57 = vpop.f32.mrb[1].mxu1 }
 0x1d1   : > { %v3561_v62 = vpop.f32.mrb[2].mxu1 }
 0x1d2   : > { %v1643_v63 = vpop.f32.mrb[3].mxu1 }
 0x1d7   : > { %v3564_v5 = vpop.f32.mrb[4].mxu1 }
 0x1d8   : > { %v1656_v49 = vpop.f32.mrb[5].mxu1 }
 0x1d9   : > { %v3565_v54 = vpop.f32.mrb[6].mxu1 }
 0x1da   : > { %v1659_v36 = vpop.f32.mrb[7].mxu1 }
 0x1df   : > { %v3568_v45 = vpop.f32.mrb[8].mxu1 }
 0x1e0   : > { %v1672_v31 = vpop.f32.mrb[9].mxu1 }
 0x1e1   : > { %v3569_v26 = vpop.f32.mrb[10].mxu1 }
 0x1e2   : > { %v1675_v29 = vpop.f32.mrb[11].mxu1 }
 0x1e7   : > { %v5181_v44 = vpop.f32.mrb[12].mxu1 }
 0x1e8   : > { %v5183_v8 = vpop.f32.mrb[13].mxu1 }
 0x1e9   : > { %v5185_v1 = vpop.f32.mrb[14].mxu1 }
 0x1ea   : > { %v5187_v40 = vpop.f32.mrb[15].mxu1 }
 0x1ef   : > { %v3730_v19 = vpop.f32.mrb[0].mxu0 }
 0x1f0   : > { %v3762_v52 = vadd.f32 %v3730_v19, %v3560_v30  ;;  %v2726_v3 = vpop.f32.mrb[1].mxu0 }
 0x1f1   : > { %v3763_v4 = vadd.f32 %v2726_v3, %v1640_v57  ;;  %v3731_v11 = vpop.f32.mrb[2].mxu0 }
 0x1f2   : > { %v2894_v21 = vadd.f32 %v3762_v52, %v5193_v16  ;;  %v3764_v13 = vadd.f32 %v3731_v11, %v3561_v62  ;;  %v2729_v24 = vpop.f32.mrb[3].mxu0 }
 0x1f3   : > { %v2892_v9 = vadd.f32 %v3763_v4, %v5193_v16  ;;  %v3765_v10 = vadd.f32 %v2729_v24, %v1643_v63 }
 0x1f4   : > { %v2926_v51 = vmax.f32 %v2894_v21, 0.0  ;;  %v2895_v33 = vadd.f32 %v3764_v13, %v5193_v16 }
 0x1f5   : > { %v2924_v39 = vmax.f32 %v2892_v9, 0.0  ;;  %v2893_v58 = vadd.f32 %v3765_v10, %v5193_v16 }
 0x1f6   : > { %2958 = vst [vmem:[%s5201_s8 + $0x10] sm:$0xff] %v2926_v51  ;;  %v2927_v42 = vmax.f32 %v2895_v33, 0.0 }
 0x1f7   : > { %2956 = vst [vmem:[%s5201_s8] sm:$0xff] %v2924_v39  ;;  %v2925_v15 = vmax.f32 %v2893_v58, 0.0  ;;  %v3734_v27 = vpop.f32.mrb[4].mxu0 }
 0x1f8   : > { %2959 = vst [vmem:[%s5201_s8 + $0x18] sm:$0xff] %v2927_v42  ;;  %v3766_v6 = vadd.f32 %v3734_v27, %v3564_v5  ;;  %v2742_v7 = vpop.f32.mrb[5].mxu0 }
 0x1f9   : > { %2957 = vst [vmem:[%s5201_s8 + $0x8] sm:$0xff] %v2925_v15  ;;  %v3767_v60 = vadd.f32 %v2742_v7, %v1656_v49  ;;  %v3735_v14 = vpop.f32.mrb[6].mxu0 }
 0x1fa   : > { %v2898_v28 = vadd.f32 %v3766_v6, %v5193_v16  ;;  %v3768_v25 = vadd.f32 %v3735_v14, %v3565_v54  ;;  %v2745_v38 = vpop.f32.mrb[7].mxu0 }
 0x1fb   : > { %v2896_v46 = vadd.f32 %v3767_v60, %v5193_v16  ;;  %v3769_v47 = vadd.f32 %v2745_v38, %v1659_v36 }
 0x1fc   : > { %v2930_v32 = vmax.f32 %v2898_v28, 0.0  ;;  %v2899_v18 = vadd.f32 %v3768_v25, %v5193_v16 }
 0x1fd   : > { %v2928_v43 = vmax.f32 %v2896_v46, 0.0  ;;  %v2897_v55 = vadd.f32 %v3769_v47, %v5193_v16 }
 0x1fe   : > { %2962 = vst [vmem:[%s5201_s8 + $0x30] sm:$0xff] %v2930_v32  ;;  %v2931_v12 = vmax.f32 %v2899_v18, 0.0 }
 0x1ff   : > { %2960 = vst [vmem:[%s5201_s8 + $0x20] sm:$0xff] %v2928_v43  ;;  %v2929_v23 = vmax.f32 %v2897_v55, 0.0  ;;  %v3738_v59 = vpop.f32.mrb[8].mxu0 }
 0x200   : > { %2963 = vst [vmem:[%s5201_s8 + $0x38] sm:$0xff] %v2931_v12  ;;  %v3770_v35 = vadd.f32 %v3738_v59, %v3568_v45  ;;  %v2758_v48 = vpop.f32.mrb[9].mxu0 }
 0x201   : > { %2961 = vst [vmem:[%s5201_s8 + $0x28] sm:$0xff] %v2929_v23  ;;  %v3771_v2 = vadd.f32 %v2758_v48, %v1672_v31  ;;  %v3739_v61 = vpop.f32.mrb[10].mxu0 }
 0x202   : > { %v2902_v56 = vadd.f32 %v3770_v35, %v5193_v16  ;;  %v3772_v53 = vadd.f32 %v3739_v61, %v3569_v26  ;;  %v2761_v17 = vpop.f32.mrb[11].mxu0 }
 0x203   : > { %v2900_v34 = vadd.f32 %v3771_v2, %v5193_v16  ;;  %v3773_v37 = vadd.f32 %v2761_v17, %v1675_v29 }
 0x204   : > { %v2934_v41 = vmax.f32 %v2902_v56, 0.0  ;;  %v2903_v50 = vadd.f32 %v3772_v53, %v5193_v16 }
 0x205   : > { %v2932_v20 = vmax.f32 %v2900_v34, 0.0  ;;  %v2901_v0 = vadd.f32 %v3773_v37, %v5193_v16 }
 0x206   : > { %2966 = vst [vmem:[%s5201_s8 + $0x50] sm:$0xff] %v2934_v41  ;;  %v2935_v22 = vmax.f32 %v2903_v50, 0.0 }
 0x207   : > { %2964 = vst [vmem:[%s5201_s8 + $0x40] sm:$0xff] %v2932_v20  ;;  %v2933_v30 = vmax.f32 %v2901_v0, 0.0  ;;  %v3742_v57 = vpop.f32.mrb[12].mxu0 }
 0x208   : > { %2967 = vst [vmem:[%s5201_s8 + $0x58] sm:$0xff] %v2935_v22  ;;  %v3774_v62 = vadd.f32 %v3742_v57, %v5181_v44  ;;  %v2774_v63 = vpop.f32.mrb[13].mxu0 }
 0x209   : > { %2965 = vst [vmem:[%s5201_s8 + $0x48] sm:$0xff] %v2933_v30  ;;  %v3775_v5 = vadd.f32 %v2774_v63, %v5183_v8  ;;  %v3743_v49 = vpop.f32.mrb[14].mxu0 }
 0x20a   : > { %v2906_v54 = vadd.f32 %v3774_v62, %v5193_v16  ;;  %v3776_v36 = vadd.f32 %v3743_v49, %v5185_v1  ;;  %v2777_v45 = vpop.f32.mrb[15].mxu0 }
 0x20b   : > { %v2904_v31 = vadd.f32 %v3775_v5, %v5193_v16  ;;  %v3777_v26 = vadd.f32 %v2777_v45, %v5187_v40 }
 0x20c   : > { %v2938_v29 = vmax.f32 %v2906_v54, 0.0  ;;  %v2907_v44 = vadd.f32 %v3776_v36, %v5193_v16 }
 0x20d   : > { %v2936_v19 = vmax.f32 %v2904_v31, 0.0  ;;  %v2905_v52 = vadd.f32 %v3777_v26, %v5193_v16 }
 0x20e   : > { %2970 = vst [vmem:[%s5201_s8 + $0x70] sm:$0xff] %v2938_v29  ;;  %v2939_v8 = vmax.f32 %v2907_v44, 0.0 }
 0x20f   : > { %2968 = vst [vmem:[%s5201_s8 + $0x60] sm:$0xff] %v2936_v19  ;;  %v2937_v3 = vmax.f32 %v2905_v52, 0.0  ;;  %v3610_v4 = vpop.f32.mrb[16].mxu1  ;;  %v3746_v11 = vpop.f32.mrb[16].mxu0 }
 0x210   : > { %2971 = vst [vmem:[%s5201_s8 + $0x78] sm:$0xff] %v2939_v8  ;;  %v3778_v1 = vadd.f32 %v3746_v11, %v3610_v4  ;;  %v1932_v21 = vpop.f32.mrb[17].mxu1  ;;  %v2790_v13 = vpop.f32.mrb[17].mxu0 }
 0x211   : > { %2969 = vst [vmem:[%s5201_s8 + $0x68] sm:$0xff] %v2937_v3  ;;  %v3779_v40 = vadd.f32 %v2790_v13, %v1932_v21  ;;  %v3611_v24 = vpop.f32.mrb[18].mxu1  ;;  %v3747_v9 = vpop.f32.mrb[18].mxu0 }
 0x212   : > { %v2910_v10 = vadd.f32 %v3778_v1, %v5193_v16  ;;  %v3780_v51 = vadd.f32 %v3747_v9, %v3611_v24  ;;  %v1935_v33 = vpop.f32.mrb[19].mxu1  ;;  %v2793_v39 = vpop.f32.mrb[19].mxu0 }
 0x213   : > { %v2908_v58 = vadd.f32 %v3779_v40, %v5193_v16  ;;  %v3781_v42 = vadd.f32 %v2793_v39, %v1935_v33 }
 0x214   : > { %v2942_v15 = vmax.f32 %v2910_v10, 0.0  ;;  %v2911_v27 = vadd.f32 %v3780_v51, %v5193_v16 }
 0x215   : > { %v2940_v6 = vmax.f32 %v2908_v58, 0.0  ;;  %v2909_v7 = vadd.f32 %v3781_v42, %v5193_v16 }
 0x216   : > { %2974 = vst [vmem:[%s5201_s8 + $0x90] sm:$0xff] %v2942_v15  ;;  %v2943_v60 = vmax.f32 %v2911_v27, 0.0 }
 0x217   : > { %2972 = vst [vmem:[%s5201_s8 + $0x80] sm:$0xff] %v2940_v6  ;;  %v2941_v14 = vmax.f32 %v2909_v7, 0.0  ;;  %v3614_v28 = vpop.f32.mrb[20].mxu1  ;;  %v3750_v25 = vpop.f32.mrb[20].mxu0 }
 0x218   : > { %2975 = vst [vmem:[%s5201_s8 + $0x98] sm:$0xff] %v2943_v60  ;;  %v3782_v38 = vadd.f32 %v3750_v25, %v3614_v28  ;;  %v1948_v46 = vpop.f32.mrb[21].mxu1  ;;  %v2806_v47 = vpop.f32.mrb[21].mxu0 }
 0x219   : > { %2973 = vst [vmem:[%s5201_s8 + $0x88] sm:$0xff] %v2941_v14  ;;  %v3783_v32 = vadd.f32 %v2806_v47, %v1948_v46  ;;  %v3615_v18 = vpop.f32.mrb[22].mxu1  ;;  %v3751_v43 = vpop.f32.mrb[22].mxu0 }
 0x21a   : > { %v2914_v55 = vadd.f32 %v3782_v38, %v5193_v16  ;;  %v3784_v12 = vadd.f32 %v3751_v43, %v3615_v18  ;;  %v1951_v23 = vpop.f32.mrb[23].mxu1  ;;  %v2809_v59 = vpop.f32.mrb[23].mxu0 }
 0x21b   : > { %v2912_v35 = vadd.f32 %v3783_v32, %v5193_v16  ;;  %v3785_v48 = vadd.f32 %v2809_v59, %v1951_v23 }
 0x21c   : > { %v2946_v2 = vmax.f32 %v2914_v55, 0.0  ;;  %v2915_v61 = vadd.f32 %v3784_v12, %v5193_v16 }
 0x21d   : > { %v2944_v56 = vmax.f32 %v2912_v35, 0.0  ;;  %v2913_v53 = vadd.f32 %v3785_v48, %v5193_v16 }
 0x21e   : > { %2978 = vst [vmem:[%s5201_s8 + $0xb0] sm:$0xff] %v2946_v2  ;;  %v2947_v17 = vmax.f32 %v2915_v61, 0.0 }
 0x21f   : > { %2976 = vst [vmem:[%s5201_s8 + $0xa0] sm:$0xff] %v2944_v56  ;;  %v2945_v34 = vmax.f32 %v2913_v53, 0.0  ;;  %v3618_v37 = vpop.f32.mrb[24].mxu1  ;;  %v3754_v41 = vpop.f32.mrb[24].mxu0 }
 0x220   : > { %2979 = vst [vmem:[%s5201_s8 + $0xb8] sm:$0xff] %v2947_v17  ;;  %v3786_v50 = vadd.f32 %v3754_v41, %v3618_v37  ;;  %v1964_v20 = vpop.f32.mrb[25].mxu1  ;;  %v2822_v0 = vpop.f32.mrb[25].mxu0 }
 0x221   : > { %2977 = vst [vmem:[%s5201_s8 + $0xa8] sm:$0xff] %v2945_v34  ;;  %v3787_v22 = vadd.f32 %v2822_v0, %v1964_v20  ;;  %v3619_v30 = vpop.f32.mrb[26].mxu1  ;;  %v3755_v57 = vpop.f32.mrb[26].mxu0 }
 0x222   : > { %v2918_v62 = vadd.f32 %v3786_v50, %v5193_v16  ;;  %v3788_v63 = vadd.f32 %v3755_v57, %v3619_v30  ;;  %v1967_v5 = vpop.f32.mrb[27].mxu1  ;;  %v2825_v49 = vpop.f32.mrb[27].mxu0 }
 0x223   : > { %v2916_v54 = vadd.f32 %v3787_v22, %v5193_v16  ;;  %v3789_v36 = vadd.f32 %v2825_v49, %v1967_v5 }
 0x224   : > { %v2950_v45 = vmax.f32 %v2918_v62, 0.0  ;;  %v2919_v31 = vadd.f32 %v3788_v63, %v5193_v16 }
 0x225   : > { %v2948_v26 = vmax.f32 %v2916_v54, 0.0  ;;  %v2917_v29 = vadd.f32 %v3789_v36, %v5193_v16 }
 0x226   : > { %2982 = vst [vmem:[%s5201_s8 + $0xd0] sm:$0xff] %v2950_v45  ;;  %v2951_v44 = vmax.f32 %v2919_v31, 0.0 }
 0x227   : > { %2980 = vst [vmem:[%s5201_s8 + $0xc0] sm:$0xff] %v2948_v26  ;;  %v2949_v19 = vmax.f32 %v2917_v29, 0.0  ;;  %v3622_v52 = vpop.f32.mrb[28].mxu1  ;;  %v3758_v8 = vpop.f32.mrb[28].mxu0 }
 0x228   : > { %2983 = vst [vmem:[%s5201_s8 + $0xd8] sm:$0xff] %v2951_v44  ;;  %v3790_v3 = vadd.f32 %v3758_v8, %v3622_v52  ;;  %v1980_v4 = vpop.f32.mrb[29].mxu1  ;;  %v2838_v11 = vpop.f32.mrb[29].mxu0 }
 0x229   : > { %2981 = vst [vmem:[%s5201_s8 + $0xc8] sm:$0xff] %v2949_v19  ;;  %v3791_v1 = vadd.f32 %v2838_v11, %v1980_v4  ;;  %v3623_v21 = vpop.f32.mrb[30].mxu1  ;;  %v3759_v13 = vpop.f32.mrb[30].mxu0 }
 0x22a   : > { %v2922_v40 = vadd.f32 %v3790_v3, %v5193_v16  ;;  %v3792_v24 = vadd.f32 %v3759_v13, %v3623_v21  ;;  %v1983_v9 = vpop.f32.mrb[31].mxu1  ;;  %v2841_v10 = vpop.f32.mrb[31].mxu0 }
 0x22b   : > { %v2920_v51 = vadd.f32 %v3791_v1, %v5193_v16  ;;  %v3793_v33 = vadd.f32 %v2841_v10, %v1983_v9 }
 0x22c   : > { %v2954_v39 = vmax.f32 %v2922_v40, 0.0  ;;  %v2923_v58 = vadd.f32 %v3792_v24, %v5193_v16 }
 0x22d   : > { %v2952_v42 = vmax.f32 %v2920_v51, 0.0  ;;  %v2921_v15 = vadd.f32 %v3793_v33, %v5193_v16 }
 0x22e   : > { %2986 = vst [vmem:[%s5201_s8 + $0xf0] sm:$0xff] %v2954_v39  ;;  %v2955_v27 = vmax.f32 %v2923_v58, 0.0 }
 0x22f   : > { %2984 = vst [vmem:[%s5201_s8 + $0xe0] sm:$0xff] %v2952_v42  ;;  %v2953_v6 = vmax.f32 %v2921_v15, 0.0 }
 0x230   : > { %2987 = vst [vmem:[%s5201_s8 + $0xf8] sm:$0xff] %v2955_v27 }
 0x231   : > { %2985 = vst [vmem:[%s5201_s8 + $0xe8] sm:$0xff] %v2953_v6 }
 0x232   : > { %4105 = shalt.err (!%p4102_p3)
}
 0x233   : > { %s4106_s27 = scalar_lea.hbm %s5269_s19, 4096  ;;  %s4110_s30 = scalar_lea.hbm %s5322_s3, 8192 }
 0x234   : > { %p4107_p4 = scmp.ne.s32.totalorder %s5269_s19, %s4106_s27  ;;  %p4111_p9 = scmp.lt.u32.totalorder %s5269_s19, %s5322_s3 }
 0x235   : > { %p4112_p10 = scmp.lt.u32.totalorder %s4110_s30, %s4106_s27  ;;  %p4114_p12 = scmp.lt.u32.totalorder %s4106_s27, %s5269_s19 }
 0x236   : > { %p4108_p7 = pnand %p4107_p4, %p4217_p5 }
 0x237   : > { %p4113_p11 = por %p4112_p10, %p4111_p9 }
 0x238   : > { %p4109_p8 = pneg %p4108_p7 }
 0x239   : > { %p4115_p13 = por %p4114_p12, %p4113_p11 }
 0x23b   : > { %p4116_p0 = pnand %p4115_p13, %p4109_p8 }
 0x23d   : > { %4119 = shalt.err (!%p4116_p0)
}
 0x23e   : > { %s4157_s6 = smov 128   ;;  %s4158_s7 = smov 8  }
 0x23f   : > { %4029 = dma.vmem_to_hbm [thread:$0]  (%p4217_p5), %s5271_s10, 4096, %s5269_s19, %s5278_s16, %s4157_s6, %s4157_s6, %s4158_s7  }
 0x240 PF: > { %p4035_p1 = scmp.ge.s32.totalorder %s4154_s15, 2  ;;  %s3017_s8 = sand.u32 1, %s4142_s12  }
 0x241   : > { %s3018_s9 = scalar_lea.sflag [#allocation3], %s3017_s8 }
 0x242   : > { %p4032_p2 = pnand %p4035_p1, %p4221_p6 }
 0x244   : > { %4137 = dma.done.wait (!%p4032_p2), %s3018_s9, 4096  }
 0x245   : > { %4139 = vsyncadd (!%p4032_p2), %s3018_s9, 4294963200  ;;  %p13_p3 = scmp.ge.s32.totalorder %s4204_s18, 4   ;;  %s5402_s12 = smov %s4146_s13 }
 0x246   : > { %s5403_s13 = smov %s4150_s14  ;;  %s5404_s14 = smov %s4215_s21 }
 0x247   : > { %s5405_s15 = smov %s4204_s18  ;;  %15 = sbr.rel (!%p13_p3) target bundleno = 3 (0x3), region = 75 }
 0x24e   :  { %3023 = vsyncpa [#allocation3], 1 }
 0x24f   :  { %3025 = vsyncpa [#allocation3 + $0x1], 1 }

</bundles_post_ra>
